<compile_context>
chip_gen: v7x
topology: tpu7x:2x2x1
jax: 0.10.0
libtpu: 0.0.40
codegen_flags: <defaults>
</compile_context>

<pallas_src>
import numpy as np
import jax
import jax.numpy as jnp
from jax.experimental import pallas as pl
from jax.experimental.pallas import tpu as pltpu


def _vmem_budget_bytes():
    """Scoped-VMEM limit to request, sized per generation (v7x: ~48MiB, v6e/v5e: ~96MiB)."""
    try:
        phys = int(pltpu.get_tpu_info().vmem_capacity_bytes)
    except Exception:
        phys = 64 << 20          # conservative fallback (v7x per-TC physical VMEM)
    return min(phys * 3 // 4, 112 << 20)


def _choose_nb(N, HW, Cin, Cb, Cout, vmem_limit_bytes):
    """Images per grid step: as many as fit the VMEM budget, keeping >=2 grid steps."""
    per_col = (2 * Cin * 2                 # x block (bf16, double-buffered)
               + 2 * 4 * Cout * 4          # out block (f32, double-buffered)
               + (2 * Cb + 2 * Cout) * 4   # pad/tap scratch bodies (f32)
               + 34 * Cb * 2               # im2row staging (bf16, 9 + 25 taps)
               + 8 * 4                     # row/col validity masks
               + (2 * Cout + 2 * Cb + 10 * Cout) * 4)   # live f32 temporaries headroom
    budget = vmem_limit_bytes // 2         # leave half for pipeline skew / spills
    nb = max(1, min(N, budget // (per_col * HW)))
    if N >= 2:
        nb = min(nb, max(1, N // 2))       # keep >= 2 grid steps (v7x megacore)
    while N % nb:                          # keep the grid exact (no batch padding)
        nb -= 1
    return nb


def _make_kernel(H, W, HW, L, PAD, Cin, Cb, Cout):
    Ctot = 2 * Cout + 2 * Cb

    def moff(d):                 # tap offset -2/-1/+1/+2 -> mask row 0/1/2/3
        return d + 2 if d < 0 else d + 1

    def kernel(x_ref, wcat_ref, w3_ref, w5_ref, scl_ref, sft_ref, cm_ref, rm_ref,
               out_ref, pad3_ref, pad5_ref, pad4a_ref, pad4b_ref, stg3_ref, stg5_ref):
        x = x_ref[0]                                         # (Cin, L) bf16, lane-dense
        scl = scl_ref[...]                                   # (Ctot + 3*Cout, 1) f32
        sft = sft_ref[...]

        # ---- fused 1x1 convolutions of all four branches: one bf16 MXU matmul ----
        big = jnp.dot(wcat_ref[...], x, preferred_element_type=jnp.float32)   # (Ctot, L)
        big = big * scl[:Ctot] + sft[:Ctot]          # first-stage BN (identity for br4)

        y1 = big[0:Cout]                                     # branch 1: BN(conv1x1)
        t2 = jnp.maximum(big[Cout:Cout + Cb], 0.0)           # branch 2 bottleneck
        t3 = jnp.maximum(big[Cout + Cb:Cout + 2 * Cb], 0.0)  # branch 3 bottleneck
        u4 = big[Cout + 2 * Cb:Ctot]                         # branch 4 conv1x1 (pre-pool)

        # Validity masks (constants, loaded once): rows 0..3 <-> offsets -2,-1,+1,+2.
        cmv = {d: cm_ref[pl.ds(moff(d), 1), :] for d in (-2, -1, 1, 2)}
        rmv = {d: rm_ref[pl.ds(moff(d), 1), :] for d in (-2, -1, 1, 2)}

        def fill_pad(pad_ref, t):
            # Lane-aligned interior at offset PAD (multiple of 128) -> unmasked body
            # store; tiny zero borders rewritten every step (parallel-safe, NaN-safe).
            z = jnp.zeros((t.shape[0], PAD), jnp.float32)
            pad_ref[:, pl.ds(0, PAD)] = z
            pad_ref[:, pl.ds(PAD, L)] = t
            pad_ref[:, pl.ds(PAD + L, PAD)] = z

        def tap(pad_ref, dy, dx):
            # Output pixel p reads source pixel p + dy*W + dx; the row/col masks zero
            # every out-of-image (and cross-image, for folded batches) contribution.
            s = pad_ref[:, pl.ds(PAD + dy * W + dx, L)]
            if dx != 0:
                s = s * cmv[dx]
            if dy != 0:
                s = s * rmv[dy]
            return s

        def conv_im2row(pad_ref, stg_ref, w_ref, k):
            # One masked bf16 store per tap into the staging slab, then a single MXU
            # matmul with K = (2k+1)^2 * Cb.
            n = 2 * k + 1
            for iy, dy in enumerate(range(-k, k + 1)):
                for ix, dx in enumerate(range(-k, k + 1)):
                    band = (iy * n + ix) * Cb
                    stg_ref[pl.ds(band, Cb), :] = tap(pad_ref, dy, dx).astype(jnp.bfloat16)
            return jnp.dot(w_ref[...], stg_ref[...], preferred_element_type=jnp.float32)

        # ---- branch 2: 3x3 conv (pad 1) over t2, then BN ----
        fill_pad(pad3_ref, t2)
        y2 = conv_im2row(pad3_ref, stg3_ref, w3_ref, 1)
        y2 = y2 * scl[Ctot:Ctot + Cout] + sft[Ctot:Ctot + Cout]

        # ---- branch 3: 5x5 conv (pad 2) over t3, then BN ----
        fill_pad(pad5_ref, t3)
        y3 = conv_im2row(pad5_ref, stg5_ref, w5_ref, 2)
        y3 = y3 * scl[Ctot + Cout:Ctot + 2 * Cout] + sft[Ctot + Cout:Ctot + 2 * Cout]

        # ---- branch 4: separable 3x3 avg-pool (count_include_pad) of conv1x1(x), BN ----
        fill_pad(pad4a_ref, u4)
        hsum = u4 + tap(pad4a_ref, 0, -1) + tap(pad4a_ref, 0, 1)
        fill_pad(pad4b_ref, hsum)
        vsum = hsum + tap(pad4b_ref, -1, 0) + tap(pad4b_ref, 1, 0)
        y4 = (vsum * scl[Ctot + 2 * Cout:Ctot + 3 * Cout]
              + sft[Ctot + 2 * Cout:Ctot + 3 * Cout])        # 1/9 folded into the scale

        # ---- per-branch ReLU + direct lane-dense stores (no concat) ----
        out_ref[0, pl.ds(0 * Cout, Cout), :] = jnp.maximum(y1, 0.0)
        out_ref[0, pl.ds(1 * Cout, Cout), :] = jnp.maximum(y2, 0.0)
        out_ref[0, pl.ds(2 * Cout, Cout), :] = jnp.maximum(y3, 0.0)
        out_ref[0, pl.ds(3 * Cout, Cout), :] = jnp.maximum(y4, 0.0)

    return kernel


def inception_block(x_nchw, params):
    """x_nchw: (N, Cin, H, W) float32 -> (N, 4*Cout, H, W) float32."""
    N, Cin, H, W = x_nchw.shape
    Cout = params["w1b1"].shape[1]
    Cb = params["w1b2"].shape[1]
    Ctot = 2 * Cout + 2 * Cb
    HW = H * W
    f32, bf16 = jnp.float32, jnp.bfloat16

    vmem_limit = _vmem_budget_bytes()
    Nb = _choose_nb(N, HW, Cin, Cb, Cout, vmem_limit)
    G = N // Nb
    L = Nb * HW
    PAD = -(-(2 * W + 2) // 128) * 128                # lane-aligned border (>= 2*W+2)

    # Batch folded into the lane dimension: (G, Cin, Nb*HW) bf16 matmul operand.
    x = (x_nchw.reshape(G, Nb, Cin, HW).transpose(0, 2, 1, 3)
         .reshape(G, Cin, L).astype(bf16))

    # Fused first-stage 1x1 weights: rows = [br1 Cout | br2 Cb | br3 Cb | br4 Cout].
    wcat = jnp.concatenate([params["w1b1"].T, params["w1b2"].T,
                            params["w1b3"].T, params["w1b4"].T], axis=0).astype(bf16)
    # im2row second-stage weights: (Cout, (2k+1)^2 * Cb), K index = (dy, dx, cin).
    w3 = jnp.transpose(params["w3b2"], (3, 0, 1, 2)).reshape(Cout, 9 * Cb).astype(bf16)
    w5 = jnp.transpose(params["w5b3"], (3, 0, 1, 2)).reshape(Cout, 25 * Cb).astype(bf16)

    # All BN scale/shift vectors packed into two (Ctot + 3*Cout, 1) arrays.  Branch 4's
    # first-stage band is the identity (its BN comes after the pool) and the avg-pool
    # 1/9 factor is folded into its scale.
    ones, zeros = jnp.ones((Cout,), f32), jnp.zeros((Cout,), f32)
    scl = jnp.concatenate([
        params["s1b1"][0], params["s1b2"][0], params["s1b3"][0], ones,
        params["s3b2"][0], params["s5b3"][0], params["s1b4"][0] / 9.0]).reshape(-1, 1)
    sft = jnp.concatenate([
        params["o1b1"][0], params["o1b2"][0], params["o1b3"][0], zeros,
        params["o3b2"][0], params["o5b3"][0], params["o1b4"][0]]).reshape(-1, 1)

    # Row/column validity masks (constants): rows 0..3 <-> tap offsets -2,-1,+1,+2.
    idx = np.arange(L)
    colw = idx % W
    rowh = (idx % HW) // W
    def _cmask(d): return ((colw < W - d) if d > 0 else (colw >= -d)).astype(np.float32)
    def _rmask(d): return ((rowh < H - d) if d > 0 else (rowh >= -d)).astype(np.float32)
    cmask = jnp.asarray(np.stack([_cmask(d) for d in (-2, -1, 1, 2)], axis=0))
    rmask = jnp.asarray(np.stack([_rmask(d) for d in (-2, -1, 1, 2)], axis=0))

    weights = [wcat, w3, w5, scl, sft, cmask, rmask]
    w_specs = [pl.BlockSpec(a.shape, lambda g: (0, 0)) for a in weights]

    kernel = _make_kernel(H, W, HW, L, PAD, Cin, Cb, Cout)

    out = pl.pallas_call(
        kernel,
        out_shape=jax.ShapeDtypeStruct((G, 4 * Cout, L), f32),
        grid_spec=pltpu.PrefetchScalarGridSpec(
            num_scalar_prefetch=0,
            grid=(G,),
            in_specs=[pl.BlockSpec((1, Cin, L), lambda g: (g, 0, 0))] + w_specs,
            out_specs=pl.BlockSpec((1, 4 * Cout, L), lambda g: (g, 0, 0)),
            scratch_shapes=[
                pltpu.VMEM((Cb, L + 2 * PAD), f32),    # 3x3 pad/tap buffer
                pltpu.VMEM((Cb, L + 2 * PAD), f32),    # 5x5 pad/tap buffer
                pltpu.VMEM((Cout, L + 2 * PAD), f32),  # avg-pool pad (conv1x1 output)
                pltpu.VMEM((Cout, L + 2 * PAD), f32),  # avg-pool pad (horizontal sum)
                pltpu.VMEM((9 * Cb, L), bf16),         # 3x3 im2row staging
                pltpu.VMEM((25 * Cb, L), bf16),        # 5x5 im2row staging
            ],
        ),
        compiler_params=pltpu.CompilerParams(
            dimension_semantics=("parallel",),         # batch axis -> both TCs on v7x
            vmem_limit_bytes=vmem_limit),
    )(x, *weights)

    return (out.reshape(G, 4 * Cout, Nb, H, W).transpose(0, 2, 1, 3, 4)
            .reshape(N, 4 * Cout, H, W))


def init_params(key, features):
    """features = [in, bottleneck, out]; conv weights stored as (kh, kw, Cin, Cout)
    (1x1 convs flattened to (Cin, Cout)); BN folded into (1, C) scale/shift."""
    Cin, Cb, Cout = features
    eps = 1e-5
    keys = iter(jax.random.split(key, 64))

    def conv_w(shape, fan_in):
        return jax.random.normal(next(keys), shape, jnp.float32) / np.sqrt(fan_in)

    def bn_fold(C):
        gamma = 1.0 + 0.1 * jax.random.normal(next(keys), (C,), jnp.float32)
        beta = 0.1 * jax.random.normal(next(keys), (C,), jnp.float32)
        mean = 0.1 * jax.random.normal(next(keys), (C,), jnp.float32)
        var = 0.5 + jax.random.uniform(next(keys), (C,), jnp.float32)
        scale = gamma / jnp.sqrt(var + eps)
        shift = beta - mean * scale
        return scale.reshape(1, C), shift.reshape(1, C)

    p = {}
    p["w1b1"] = conv_w((Cin, Cout), Cin)
    p["s1b1"], p["o1b1"] = bn_fold(Cout)
    p["w1b2"] = conv_w((Cin, Cb), Cin)
    p["s1b2"], p["o1b2"] = bn_fold(Cb)
    p["w3b2"] = conv_w((3, 3, Cb, Cout), 9 * Cb)
    p["s3b2"], p["o3b2"] = bn_fold(Cout)
    p["w1b3"] = conv_w((Cin, Cb), Cin)
    p["s1b3"], p["o1b3"] = bn_fold(Cb)
    p["w5b3"] = conv_w((5, 5, Cb, Cout), 25 * Cb)
    p["s5b3"], p["o5b3"] = bn_fold(Cout)
    p["w1b4"] = conv_w((Cin, Cout), Cin)
    p["s1b4"], p["o1b4"] = bn_fold(Cout)
    return p


def reference(x_nchw, p):
    """Pure-JAX f32 reference (same math as the PyTorch forward with eval-mode BN)."""
    x = jnp.transpose(x_nchw, (0, 2, 3, 1))
    H, W = x.shape[1], x.shape[2]

    def conv1x1(t, w):
        return jnp.einsum("nhwc,cd->nhwd", t, w)

    def convk(t, w, pad):
        k = w.shape[0]
        tp = jnp.pad(t, ((0, 0), (pad, pad), (pad, pad), (0, 0)))
        out = jnp.zeros(t.shape[:3] + (w.shape[-1],), jnp.float32)
        for dy in range(k):
            for dx in range(k):
                out = out + jnp.einsum("nhwc,cd->nhwd",
                                       tp[:, dy:dy + H, dx:dx + W, :], w[dy, dx])
        return out

    def bn(t, s, o):
        return t * s[0] + o[0]

    x1 = bn(conv1x1(x, p["w1b1"]), p["s1b1"], p["o1b1"])
    t2 = jax.nn.relu(bn(conv1x1(x, p["w1b2"]), p["s1b2"], p["o1b2"]))
    x2 = bn(convk(t2, p["w3b2"], 1), p["s3b2"], p["o3b2"])
    t3 = jax.nn.relu(bn(conv1x1(x, p["w1b3"]), p["s1b3"], p["o1b3"]))
    x3 = bn(convk(t3, p["w5b3"], 2), p["s5b3"], p["o5b3"])
    xp = jnp.pad(x, ((0, 0), (1, 1), (1, 1), (0, 0)))
    pool = sum(xp[:, dy:dy + H, dx:dx + W, :]
               for dy in range(3) for dx in range(3)) / 9.0
    x4 = bn(conv1x1(pool, p["w1b4"]), p["s1b4"], p["o1b4"])
    y = jax.nn.relu(jnp.concatenate([x1, x2, x3, x4], axis=-1))
    return jnp.transpose(y, (0, 3, 1, 2))


if __name__ == "__main__":
    # features = [in, bottleneck, out]  ->  output channels = 4 * out
    features = [4, 8, 8]
    N, H, W = 2, 16, 16

    key = jax.random.PRNGKey(0)
    kx, kp = jax.random.split(key)
    x = jax.random.normal(kx, (N, features[0], H, W), jnp.float32)
    params = init_params(kp, features)

    out = jax.block_until_ready(inception_block(x, params))
    expected = reference(x, params)

    assert out.shape == (N, 4 * features[2], H, W), out.shape
    out_np, exp_np = np.asarray(out), np.asarray(expected)
    # Tolerances account for bf16 matmul operands with f32 accumulation.
    rms_rel = float(np.sqrt(np.mean((out_np - exp_np) ** 2))
                    / (np.sqrt(np.mean(exp_np ** 2)) + 1e-12))
    assert rms_rel < 5e-2, rms_rel
    np.testing.assert_allclose(out_np, exp_np, rtol=5e-2, atol=1e-1)
    print("KERNEL_OK")
</pallas_src>

<mosaic_0001>
module attributes {stable_mosaic.version = 11 : i64} {
  func.func @kernel(%arg0: i32, %arg1: memref<1x4x256xbf16, #tpu.memory_space<vmem>>, %arg2: memref<32x4xbf16, #tpu.memory_space<vmem>>, %arg3: memref<8x72xbf16, #tpu.memory_space<vmem>>, %arg4: memref<8x200xbf16, #tpu.memory_space<vmem>>, %arg5: memref<56x1xf32, #tpu.memory_space<vmem>>, %arg6: memref<56x1xf32, #tpu.memory_space<vmem>>, %arg7: memref<4x256xf32, #tpu.memory_space<vmem>>, %arg8: memref<4x256xf32, #tpu.memory_space<vmem>>, %arg9: memref<1x32x256xf32, #tpu.memory_space<vmem>>, %arg10: memref<8x512xf32, #tpu.memory_space<vmem>>, %arg11: memref<8x512xf32, #tpu.memory_space<vmem>>, %arg12: memref<8x512xf32, #tpu.memory_space<vmem>>, %arg13: memref<8x512xf32, #tpu.memory_space<vmem>>, %arg14: memref<72x256xbf16, #tpu.memory_space<vmem>>, %arg15: memref<200x256xbf16, #tpu.memory_space<vmem>>) attributes {dimension_semantics = [#tpu.dimension_semantics<parallel>], iteration_bounds = array<i64: 2>, scalar_prefetch = 0 : i64, scratch_operands = 6 : i64, tpu.core_type = #tpu.core_type<tc>, window_params = [{transform_indices = @transform_0, window_bounds = array<i64: 1, 4, 256>}, {pipeline_mode = #tpu.pipeline_mode<synchronous>, transform_indices = @transform_1, window_bounds = array<i64: 32, 4>}, {pipeline_mode = #tpu.pipeline_mode<synchronous>, transform_indices = @transform_2, window_bounds = array<i64: 8, 72>}, {pipeline_mode = #tpu.pipeline_mode<synchronous>, transform_indices = @transform_3, window_bounds = array<i64: 8, 200>}, {pipeline_mode = #tpu.pipeline_mode<synchronous>, transform_indices = @transform_4, window_bounds = array<i64: 56, 1>}, {pipeline_mode = #tpu.pipeline_mode<synchronous>, transform_indices = @transform_5, window_bounds = array<i64: 56, 1>}, {pipeline_mode = #tpu.pipeline_mode<synchronous>, transform_indices = @transform_6, window_bounds = array<i64: 4, 256>}, {pipeline_mode = #tpu.pipeline_mode<synchronous>, transform_indices = @transform_7, window_bounds = array<i64: 4, 256>}, {transform_indices = @transform_8, window_bounds = array<i64: 1, 32, 256>}]} {
    %c0 = arith.constant 0 : index
    %c0_0 = arith.constant 0 : index
    %c0_1 = arith.constant 0 : index
    %0 = vector.load %arg1[%c0, %c0_0, %c0_1] : memref<1x4x256xbf16, #tpu.memory_space<vmem>>, vector<1x4x256xbf16>
    %1 = vector.shape_cast %0 : vector<1x4x256xbf16> to vector<4x256xbf16>
    %c0_2 = arith.constant 0 : index
    %c0_3 = arith.constant 0 : index
    %2 = vector.load %arg5[%c0_2, %c0_3] : memref<56x1xf32, #tpu.memory_space<vmem>>, vector<56x1xf32>
    %c0_4 = arith.constant 0 : index
    %c0_5 = arith.constant 0 : index
    %3 = vector.load %arg6[%c0_4, %c0_5] : memref<56x1xf32, #tpu.memory_space<vmem>>, vector<56x1xf32>
    %c0_6 = arith.constant 0 : index
    %c0_7 = arith.constant 0 : index
    %4 = vector.load %arg2[%c0_6, %c0_7] : memref<32x4xbf16, #tpu.memory_space<vmem>>, vector<32x4xbf16>
    %cst = arith.constant dense<0.000000e+00> : vector<32x256xf32>
    %5 = tpu.matmul %4, %1, %cst {dimension_numbers = #tpu.dot_dimension_numbers<[1], [0], [0], [1], [0, 0, 1, 1], [], []>} : vector<32x4xbf16>, vector<4x256xbf16>, vector<32x256xf32> -> vector<32x256xf32>
    %6 = vector.extract_strided_slice %2 {offsets = [0, 0], sizes = [32, 1], strides = [1, 1]} : vector<56x1xf32> to vector<32x1xf32>
    %7 = vector.broadcast %6 : vector<32x1xf32> to vector<32x256xf32>
    %8 = arith.mulf %5, %7 : vector<32x256xf32>
    %9 = vector.extract_strided_slice %3 {offsets = [0, 0], sizes = [32, 1], strides = [1, 1]} : vector<56x1xf32> to vector<32x1xf32>
    %10 = vector.broadcast %9 : vector<32x1xf32> to vector<32x256xf32>
    %11 = arith.addf %8, %10 : vector<32x256xf32>
    %12 = vector.extract_strided_slice %11 {offsets = [0, 0], sizes = [8, 256], strides = [1, 1]} : vector<32x256xf32> to vector<8x256xf32>
    %13 = vector.extract_strided_slice %11 {offsets = [8, 0], sizes = [8, 256], strides = [1, 1]} : vector<32x256xf32> to vector<8x256xf32>
    %cst_8 = arith.constant 0.000000e+00 : f32
    %14 = vector.broadcast %cst_8 : f32 to vector<8x256xf32>
    %15 = arith.maximumf %13, %14 : vector<8x256xf32>
    %16 = vector.extract_strided_slice %11 {offsets = [16, 0], sizes = [8, 256], strides = [1, 1]} : vector<32x256xf32> to vector<8x256xf32>
    %cst_9 = arith.constant 0.000000e+00 : f32
    %17 = vector.broadcast %cst_9 : f32 to vector<8x256xf32>
    %18 = arith.maximumf %16, %17 : vector<8x256xf32>
    %19 = vector.extract_strided_slice %11 {offsets = [24, 0], sizes = [8, 256], strides = [1, 1]} : vector<32x256xf32> to vector<8x256xf32>
    %c0_10 = arith.constant 0 : index
    %c0_11 = arith.constant 0 : index
    %20 = vector.load %arg7[%c0_10, %c0_11] : memref<4x256xf32, #tpu.memory_space<vmem>>, vector<1x256xf32>
    %c1 = arith.constant 1 : index
    %c0_12 = arith.constant 0 : index
    %21 = vector.load %arg7[%c1, %c0_12] : memref<4x256xf32, #tpu.memory_space<vmem>>, vector<1x256xf32>
    %c2 = arith.constant 2 : index
    %c0_13 = arith.constant 0 : index
    %22 = vector.load %arg7[%c2, %c0_13] : memref<4x256xf32, #tpu.memory_space<vmem>>, vector<1x256xf32>
    %c3 = arith.constant 3 : index
    %c0_14 = arith.constant 0 : index
    %23 = vector.load %arg7[%c3, %c0_14] : memref<4x256xf32, #tpu.memory_space<vmem>>, vector<1x256xf32>
    %c0_15 = arith.constant 0 : index
    %c0_16 = arith.constant 0 : index
    %24 = vector.load %arg8[%c0_15, %c0_16] : memref<4x256xf32, #tpu.memory_space<vmem>>, vector<1x256xf32>
    %c1_17 = arith.constant 1 : index
    %c0_18 = arith.constant 0 : index
    %25 = vector.load %arg8[%c1_17, %c0_18] : memref<4x256xf32, #tpu.memory_space<vmem>>, vector<1x256xf32>
    %c2_19 = arith.constant 2 : index
    %c0_20 = arith.constant 0 : index
    %26 = vector.load %arg8[%c2_19, %c0_20] : memref<4x256xf32, #tpu.memory_space<vmem>>, vector<1x256xf32>
    %c3_21 = arith.constant 3 : index
    %c0_22 = arith.constant 0 : index
    %27 = vector.load %arg8[%c3_21, %c0_22] : memref<4x256xf32, #tpu.memory_space<vmem>>, vector<1x256xf32>
    %cst_23 = arith.constant 0.000000e+00 : f32
    %28 = vector.broadcast %cst_23 : f32 to vector<8x128xf32>
    %c0_24 = arith.constant 0 : index
    %c0_25 = arith.constant 0 : index
    %29 = vector.load %arg10[%c0_24, %c0_25] : memref<8x512xf32, #tpu.memory_space<vmem>>, vector<8x128xf32>
    tpu.vector_store %arg10[%c0_24, %c0_25], %28 {strides = array<i32>} : memref<8x512xf32, #tpu.memory_space<vmem>>, vector<8x128xf32>,
    %c0_26 = arith.constant 0 : index
    %c128 = arith.constant 128 : index
    %30 = vector.load %arg10[%c0_26, %c128] : memref<8x512xf32, #tpu.memory_space<vmem>>, vector<8x256xf32>
    tpu.vector_store %arg10[%c0_26, %c128], %15 {strides = array<i32>} : memref<8x512xf32, #tpu.memory_space<vmem>>, vector<8x256xf32>,
    %c0_27 = arith.constant 0 : index
    %c384 = arith.constant 384 : index
    %31 = vector.load %arg10[%c0_27, %c384] : memref<8x512xf32, #tpu.memory_space<vmem>>, vector<8x128xf32>
    tpu.vector_store %arg10[%c0_27, %c384], %28 {strides = array<i32>} : memref<8x512xf32, #tpu.memory_space<vmem>>, vector<8x128xf32>,
    %c0_28 = arith.constant 0 : index
    %c111 = arith.constant 111 : index
    %32 = vector.load %arg10[%c0_28, %c111] : memref<8x512xf32, #tpu.memory_space<vmem>>, vector<8x256xf32>
    %33 = vector.broadcast %21 : vector<1x256xf32> to vector<8x256xf32>
    %34 = arith.mulf %32, %33 : vector<8x256xf32>
    %35 = vector.broadcast %25 : vector<1x256xf32> to vector<8x256xf32>
    %36 = arith.mulf %34, %35 : vector<8x256xf32>
    %37 = arith.truncf %36 : vector<8x256xf32> to vector<8x256xbf16>
    %c0_29 = arith.constant 0 : index
    %c0_30 = arith.constant 0 : index
    %38 = vector.load %arg14[%c0_29, %c0_30] : memref<72x256xbf16, #tpu.memory_space<vmem>>, vector<8x256xbf16>
    tpu.vector_store %arg14[%c0_29, %c0_30], %37 {strides = array<i32>} : memref<72x256xbf16, #tpu.memory_space<vmem>>, vector<8x256xbf16>,
    %c0_31 = arith.constant 0 : index
    %c112 = arith.constant 112 : index
    %39 = vector.load %arg10[%c0_31, %c112] : memref<8x512xf32, #tpu.memory_space<vmem>>, vector<8x256xf32>
    %40 = vector.broadcast %25 : vector<1x256xf32> to vector<8x256xf32>
    %41 = arith.mulf %39, %40 : vector<8x256xf32>
    %42 = arith.truncf %41 : vector<8x256xf32> to vector<8x256xbf16>
    %c8 = arith.constant 8 : index
    %c0_32 = arith.constant 0 : index
    %43 = vector.load %arg14[%c8, %c0_32] : memref<72x256xbf16, #tpu.memory_space<vmem>>, vector<8x256xbf16>
    tpu.vector_store %arg14[%c8, %c0_32], %42 {strides = array<i32>} : memref<72x256xbf16, #tpu.memory_space<vmem>>, vector<8x256xbf16>,
    %c0_33 = arith.constant 0 : index
    %c113 = arith.constant 113 : index
    %44 = vector.load %arg10[%c0_33, %c113] : memref<8x512xf32, #tpu.memory_space<vmem>>, vector<8x256xf32>
    %45 = vector.broadcast %22 : vector<1x256xf32> to vector<8x256xf32>
    %46 = arith.mulf %44, %45 : vector<8x256xf32>
    %47 = vector.broadcast %25 : vector<1x256xf32> to vector<8x256xf32>
    %48 = arith.mulf %46, %47 : vector<8x256xf32>
    %49 = arith.truncf %48 : vector<8x256xf32> to vector<8x256xbf16>
    %c16 = arith.constant 16 : index
    %c0_34 = arith.constant 0 : index
    %50 = vector.load %arg14[%c16, %c0_34] : memref<72x256xbf16, #tpu.memory_space<vmem>>, vector<8x256xbf16>
    tpu.vector_store %arg14[%c16, %c0_34], %49 {strides = array<i32>} : memref<72x256xbf16, #tpu.memory_space<vmem>>, vector<8x256xbf16>,
    %c0_35 = arith.constant 0 : index
    %c127 = arith.constant 127 : index
    %51 = vector.load %arg10[%c0_35, %c127] : memref<8x512xf32, #tpu.memory_space<vmem>>, vector<8x256xf32>
    %52 = vector.broadcast %21 : vector<1x256xf32> to vector<8x256xf32>
    %53 = arith.mulf %51, %52 : vector<8x256xf32>
    %54 = arith.truncf %53 : vector<8x256xf32> to vector<8x256xbf16>
    %c24 = arith.constant 24 : index
    %c0_36 = arith.constant 0 : index
    %55 = vector.load %arg14[%c24, %c0_36] : memref<72x256xbf16, #tpu.memory_space<vmem>>, vector<8x256xbf16>
    tpu.vector_store %arg14[%c24, %c0_36], %54 {strides = array<i32>} : memref<72x256xbf16, #tpu.memory_space<vmem>>, vector<8x256xbf16>,
    %c0_37 = arith.constant 0 : index
    %c128_38 = arith.constant 128 : index
    %56 = vector.load %arg10[%c0_37, %c128_38] : memref<8x512xf32, #tpu.memory_space<vmem>>, vector<8x256xf32>
    %57 = arith.truncf %56 : vector<8x256xf32> to vector<8x256xbf16>
    %c32 = arith.constant 32 : index
    %c0_39 = arith.constant 0 : index
    %58 = vector.load %arg14[%c32, %c0_39] : memref<72x256xbf16, #tpu.memory_space<vmem>>, vector<8x256xbf16>
    tpu.vector_store %arg14[%c32, %c0_39], %57 {strides = array<i32>} : memref<72x256xbf16, #tpu.memory_space<vmem>>, vector<8x256xbf16>,
    %c0_40 = arith.constant 0 : index
    %c129 = arith.constant 129 : index
    %59 = vector.load %arg10[%c0_40, %c129] : memref<8x512xf32, #tpu.memory_space<vmem>>, vector<8x256xf32>
    %60 = vector.broadcast %22 : vector<1x256xf32> to vector<8x256xf32>
    %61 = arith.mulf %59, %60 : vector<8x256xf32>
    %62 = arith.truncf %61 : vector<8x256xf32> to vector<8x256xbf16>
    %c40 = arith.constant 40 : index
    %c0_41 = arith.constant 0 : index
    %63 = vector.load %arg14[%c40, %c0_41] : memref<72x256xbf16, #tpu.memory_space<vmem>>, vector<8x256xbf16>
    tpu.vector_store %arg14[%c40, %c0_41], %62 {strides = array<i32>} : memref<72x256xbf16, #tpu.memory_space<vmem>>, vector<8x256xbf16>,
    %c0_42 = arith.constant 0 : index
    %c143 = arith.constant 143 : index
    %64 = vector.load %arg10[%c0_42, %c143] : memref<8x512xf32, #tpu.memory_space<vmem>>, vector<8x256xf32>
    %65 = vector.broadcast %21 : vector<1x256xf32> to vector<8x256xf32>
    %66 = arith.mulf %64, %65 : vector<8x256xf32>
    %67 = vector.broadcast %26 : vector<1x256xf32> to vector<8x256xf32>
    %68 = arith.mulf %66, %67 : vector<8x256xf32>
    %69 = arith.truncf %68 : vector<8x256xf32> to vector<8x256xbf16>
    %c48 = arith.constant 48 : index
    %c0_43 = arith.constant 0 : index
    %70 = vector.load %arg14[%c48, %c0_43] : memref<72x256xbf16, #tpu.memory_space<vmem>>, vector<8x256xbf16>
    tpu.vector_store %arg14[%c48, %c0_43], %69 {strides = array<i32>} : memref<72x256xbf16, #tpu.memory_space<vmem>>, vector<8x256xbf16>,
    %c0_44 = arith.constant 0 : index
    %c144 = arith.constant 144 : index
    %71 = vector.load %arg10[%c0_44, %c144] : memref<8x512xf32, #tpu.memory_space<vmem>>, vector<8x256xf32>
    %72 = vector.broadcast %26 : vector<1x256xf32> to vector<8x256xf32>
    %73 = arith.mulf %71, %72 : vector<8x256xf32>
    %74 = arith.truncf %73 : vector<8x256xf32> to vector<8x256xbf16>
    %c56 = arith.constant 56 : index
    %c0_45 = arith.constant 0 : index
    %75 = vector.load %arg14[%c56, %c0_45] : memref<72x256xbf16, #tpu.memory_space<vmem>>, vector<8x256xbf16>
    tpu.vector_store %arg14[%c56, %c0_45], %74 {strides = array<i32>} : memref<72x256xbf16, #tpu.memory_space<vmem>>, vector<8x256xbf16>,
    %c0_46 = arith.constant 0 : index
    %c145 = arith.constant 145 : index
    %76 = vector.load %arg10[%c0_46, %c145] : memref<8x512xf32, #tpu.memory_space<vmem>>, vector<8x256xf32>
    %77 = vector.broadcast %22 : vector<1x256xf32> to vector<8x256xf32>
    %78 = arith.mulf %76, %77 : vector<8x256xf32>
    %79 = vector.broadcast %26 : vector<1x256xf32> to vector<8x256xf32>
    %80 = arith.mulf %78, %79 : vector<8x256xf32>
    %81 = arith.truncf %80 : vector<8x256xf32> to vector<8x256xbf16>
    %c64 = arith.constant 64 : index
    %c0_47 = arith.constant 0 : index
    %82 = vector.load %arg14[%c64, %c0_47] : memref<72x256xbf16, #tpu.memory_space<vmem>>, vector<8x256xbf16>
    tpu.vector_store %arg14[%c64, %c0_47], %81 {strides = array<i32>} : memref<72x256xbf16, #tpu.memory_space<vmem>>, vector<8x256xbf16>,
    %c0_48 = arith.constant 0 : index
    %c0_49 = arith.constant 0 : index
    %83 = vector.load %arg3[%c0_48, %c0_49] : memref<8x72xbf16, #tpu.memory_space<vmem>>, vector<8x72xbf16>
    %c0_50 = arith.constant 0 : index
    %c0_51 = arith.constant 0 : index
    %84 = vector.load %arg14[%c0_50, %c0_51] : memref<72x256xbf16, #tpu.memory_space<vmem>>, vector<72x256xbf16>
    %cst_52 = arith.constant dense<0.000000e+00> : vector<8x256xf32>
    %85 = tpu.matmul %83, %84, %cst_52 {dimension_numbers = #tpu.dot_dimension_numbers<[1], [0], [0], [1], [0, 0, 1, 1], [], []>} : vector<8x72xbf16>, vector<72x256xbf16>, vector<8x256xf32> -> vector<8x256xf32>
    %86 = vector.extract_strided_slice %2 {offsets = [32, 0], sizes = [8, 1], strides = [1, 1]} : vector<56x1xf32> to vector<8x1xf32>
    %87 = vector.broadcast %86 : vector<8x1xf32> to vector<8x256xf32>
    %88 = arith.mulf %85, %87 : vector<8x256xf32>
    %89 = vector.extract_strided_slice %3 {offsets = [32, 0], sizes = [8, 1], strides = [1, 1]} : vector<56x1xf32> to vector<8x1xf32>
    %90 = vector.broadcast %89 : vector<8x1xf32> to vector<8x256xf32>
    %91 = arith.addf %88, %90 : vector<8x256xf32>
    %cst_53 = arith.constant 0.000000e+00 : f32
    %92 = vector.broadcast %cst_53 : f32 to vector<8x128xf32>
    %c0_54 = arith.constant 0 : index
    %c0_55 = arith.constant 0 : index
    %93 = vector.load %arg11[%c0_54, %c0_55] : memref<8x512xf32, #tpu.memory_space<vmem>>, vector<8x128xf32>
    tpu.vector_store %arg11[%c0_54, %c0_55], %92 {strides = array<i32>} : memref<8x512xf32, #tpu.memory_space<vmem>>, vector<8x128xf32>,
    %c0_56 = arith.constant 0 : index
    %c128_57 = arith.constant 128 : index
    %94 = vector.load %arg11[%c0_56, %c128_57] : memref<8x512xf32, #tpu.memory_space<vmem>>, vector<8x256xf32>
    tpu.vector_store %arg11[%c0_56, %c128_57], %18 {strides = array<i32>} : memref<8x512xf32, #tpu.memory_space<vmem>>, vector<8x256xf32>,
    %c0_58 = arith.constant 0 : index
    %c384_59 = arith.constant 384 : index
    %95 = vector.load %arg11[%c0_58, %c384_59] : memref<8x512xf32, #tpu.memory_space<vmem>>, vector<8x128xf32>
    tpu.vector_store %arg11[%c0_58, %c384_59], %92 {strides = array<i32>} : memref<8x512xf32, #tpu.memory_space<vmem>>, vector<8x128xf32>,
    %c0_60 = arith.constant 0 : index
    %c94 = arith.constant 94 : index
    %96 = vector.load %arg11[%c0_60, %c94] : memref<8x512xf32, #tpu.memory_space<vmem>>, vector<8x256xf32>
    %97 = vector.broadcast %20 : vector<1x256xf32> to vector<8x256xf32>
    %98 = arith.mulf %96, %97 : vector<8x256xf32>
    %99 = vector.broadcast %24 : vector<1x256xf32> to vector<8x256xf32>
    %100 = arith.mulf %98, %99 : vector<8x256xf32>
    %101 = arith.truncf %100 : vector<8x256xf32> to vector<8x256xbf16>
    %c0_61 = arith.constant 0 : index
    %c0_62 = arith.constant 0 : index
    %102 = vector.load %arg15[%c0_61, %c0_62] : memref<200x256xbf16, #tpu.memory_space<vmem>>, vector<8x256xbf16>
    tpu.vector_store %arg15[%c0_61, %c0_62], %101 {strides = array<i32>} : memref<200x256xbf16, #tpu.memory_space<vmem>>, vector<8x256xbf16>,
    %c0_63 = arith.constant 0 : index
    %c95 = arith.constant 95 : index
    %103 = vector.load %arg11[%c0_63, %c95] : memref<8x512xf32, #tpu.memory_space<vmem>>, vector<8x256xf32>
    %104 = vector.broadcast %21 : vector<1x256xf32> to vector<8x256xf32>
    %105 = arith.mulf %103, %104 : vector<8x256xf32>
    %106 = vector.broadcast %24 : vector<1x256xf32> to vector<8x256xf32>
    %107 = arith.mulf %105, %106 : vector<8x256xf32>
    %108 = arith.truncf %107 : vector<8x256xf32> to vector<8x256xbf16>
    %c8_64 = arith.constant 8 : index
    %c0_65 = arith.constant 0 : index
    %109 = vector.load %arg15[%c8_64, %c0_65] : memref<200x256xbf16, #tpu.memory_space<vmem>>, vector<8x256xbf16>
    tpu.vector_store %arg15[%c8_64, %c0_65], %108 {strides = array<i32>} : memref<200x256xbf16, #tpu.memory_space<vmem>>, vector<8x256xbf16>,
    %c0_66 = arith.constant 0 : index
    %c96 = arith.constant 96 : index
    %110 = vector.load %arg11[%c0_66, %c96] : memref<8x512xf32, #tpu.memory_space<vmem>>, vector<8x256xf32>
    %111 = vector.broadcast %24 : vector<1x256xf32> to vector<8x256xf32>
    %112 = arith.mulf %110, %111 : vector<8x256xf32>
    %113 = arith.truncf %112 : vector<8x256xf32> to vector<8x256xbf16>
    %c16_67 = arith.constant 16 : index
    %c0_68 = arith.constant 0 : index
    %114 = vector.load %arg15[%c16_67, %c0_68] : memref<200x256xbf16, #tpu.memory_space<vmem>>, vector<8x256xbf16>
    tpu.vector_store %arg15[%c16_67, %c0_68], %113 {strides = array<i32>} : memref<200x256xbf16, #tpu.memory_space<vmem>>, vector<8x256xbf16>,
    %c0_69 = arith.constant 0 : index
    %c97 = arith.constant 97 : index
    %115 = vector.load %arg11[%c0_69, %c97] : memref<8x512xf32, #tpu.memory_space<vmem>>, vector<8x256xf32>
    %116 = vector.broadcast %22 : vector<1x256xf32> to vector<8x256xf32>
    %117 = arith.mulf %115, %116 : vector<8x256xf32>
    %118 = vector.broadcast %24 : vector<1x256xf32> to vector<8x256xf32>
    %119 = arith.mulf %117, %118 : vector<8x256xf32>
    %120 = arith.truncf %119 : vector<8x256xf32> to vector<8x256xbf16>
    %c24_70 = arith.constant 24 : index
    %c0_71 = arith.constant 0 : index
    %121 = vector.load %arg15[%c24_70, %c0_71] : memref<200x256xbf16, #tpu.memory_space<vmem>>, vector<8x256xbf16>
    tpu.vector_store %arg15[%c24_70, %c0_71], %120 {strides = array<i32>} : memref<200x256xbf16, #tpu.memory_space<vmem>>, vector<8x256xbf16>,
    %c0_72 = arith.constant 0 : index
    %c98 = arith.constant 98 : index
    %122 = vector.load %arg11[%c0_72, %c98] : memref<8x512xf32, #tpu.memory_space<vmem>>, vector<8x256xf32>
    %123 = vector.broadcast %23 : vector<1x256xf32> to vector<8x256xf32>
    %124 = arith.mulf %122, %123 : vector<8x256xf32>
    %125 = vector.broadcast %24 : vector<1x256xf32> to vector<8x256xf32>
    %126 = arith.mulf %124, %125 : vector<8x256xf32>
    %127 = arith.truncf %126 : vector<8x256xf32> to vector<8x256xbf16>
    %c32_73 = arith.constant 32 : index
    %c0_74 = arith.constant 0 : index
    %128 = vector.load %arg15[%c32_73, %c0_74] : memref<200x256xbf16, #tpu.memory_space<vmem>>, vector<8x256xbf16>
    tpu.vector_store %arg15[%c32_73, %c0_74], %127 {strides = array<i32>} : memref<200x256xbf16, #tpu.memory_space<vmem>>, vector<8x256xbf16>,
    %c0_75 = arith.constant 0 : index
    %c110 = arith.constant 110 : index
    %129 = vector.load %arg11[%c0_75, %c110] : memref<8x512xf32, #tpu.memory_space<vmem>>, vector<8x256xf32>
    %130 = vector.broadcast %20 : vector<1x256xf32> to vector<8x256xf32>
    %131 = arith.mulf %129, %130 : vector<8x256xf32>
    %132 = vector.broadcast %25 : vector<1x256xf32> to vector<8x256xf32>
    %133 = arith.mulf %131, %132 : vector<8x256xf32>
    %134 = arith.truncf %133 : vector<8x256xf32> to vector<8x256xbf16>
    %c40_76 = arith.constant 40 : index
    %c0_77 = arith.constant 0 : index
    %135 = vector.load %arg15[%c40_76, %c0_77] : memref<200x256xbf16, #tpu.memory_space<vmem>>, vector<8x256xbf16>
    tpu.vector_store %arg15[%c40_76, %c0_77], %134 {strides = array<i32>} : memref<200x256xbf16, #tpu.memory_space<vmem>>, vector<8x256xbf16>,
    %c0_78 = arith.constant 0 : index
    %c111_79 = arith.constant 111 : index
    %136 = vector.load %arg11[%c0_78, %c111_79] : memref<8x512xf32, #tpu.memory_space<vmem>>, vector<8x256xf32>
    %137 = vector.broadcast %21 : vector<1x256xf32> to vector<8x256xf32>
    %138 = arith.mulf %136, %137 : vector<8x256xf32>
    %139 = vector.broadcast %25 : vector<1x256xf32> to vector<8x256xf32>
    %140 = arith.mulf %138, %139 : vector<8x256xf32>
    %141 = arith.truncf %140 : vector<8x256xf32> to vector<8x256xbf16>
    %c48_80 = arith.constant 48 : index
    %c0_81 = arith.constant 0 : index
    %142 = vector.load %arg15[%c48_80, %c0_81] : memref<200x256xbf16, #tpu.memory_space<vmem>>, vector<8x256xbf16>
    tpu.vector_store %arg15[%c48_80, %c0_81], %141 {strides = array<i32>} : memref<200x256xbf16, #tpu.memory_space<vmem>>, vector<8x256xbf16>,
    %c0_82 = arith.constant 0 : index
    %c112_83 = arith.constant 112 : index
    %143 = vector.load %arg11[%c0_82, %c112_83] : memref<8x512xf32, #tpu.memory_space<vmem>>, vector<8x256xf32>
    %144 = vector.broadcast %25 : vector<1x256xf32> to vector<8x256xf32>
    %145 = arith.mulf %143, %144 : vector<8x256xf32>
    %146 = arith.truncf %145 : vector<8x256xf32> to vector<8x256xbf16>
    %c56_84 = arith.constant 56 : index
    %c0_85 = arith.constant 0 : index
    %147 = vector.load %arg15[%c56_84, %c0_85] : memref<200x256xbf16, #tpu.memory_space<vmem>>, vector<8x256xbf16>
    tpu.vector_store %arg15[%c56_84, %c0_85], %146 {strides = array<i32>} : memref<200x256xbf16, #tpu.memory_space<vmem>>, vector<8x256xbf16>,
    %c0_86 = arith.constant 0 : index
    %c113_87 = arith.constant 113 : index
    %148 = vector.load %arg11[%c0_86, %c113_87] : memref<8x512xf32, #tpu.memory_space<vmem>>, vector<8x256xf32>
    %149 = vector.broadcast %22 : vector<1x256xf32> to vector<8x256xf32>
    %150 = arith.mulf %148, %149 : vector<8x256xf32>
    %151 = vector.broadcast %25 : vector<1x256xf32> to vector<8x256xf32>
    %152 = arith.mulf %150, %151 : vector<8x256xf32>
    %153 = arith.truncf %152 : vector<8x256xf32> to vector<8x256xbf16>
    %c64_88 = arith.constant 64 : index
    %c0_89 = arith.constant 0 : index
    %154 = vector.load %arg15[%c64_88, %c0_89] : memref<200x256xbf16, #tpu.memory_space<vmem>>, vector<8x256xbf16>
    tpu.vector_store %arg15[%c64_88, %c0_89], %153 {strides = array<i32>} : memref<200x256xbf16, #tpu.memory_space<vmem>>, vector<8x256xbf16>,
    %c0_90 = arith.constant 0 : index
    %c114 = arith.constant 114 : index
    %155 = vector.load %arg11[%c0_90, %c114] : memref<8x512xf32, #tpu.memory_space<vmem>>, vector<8x256xf32>
    %156 = vector.broadcast %23 : vector<1x256xf32> to vector<8x256xf32>
    %157 = arith.mulf %155, %156 : vector<8x256xf32>
    %158 = vector.broadcast %25 : vector<1x256xf32> to vector<8x256xf32>
    %159 = arith.mulf %157, %158 : vector<8x256xf32>
    %160 = arith.truncf %159 : vector<8x256xf32> to vector<8x256xbf16>
    %c72 = arith.constant 72 : index
    %c0_91 = arith.constant 0 : index
    %161 = vector.load %arg15[%c72, %c0_91] : memref<200x256xbf16, #tpu.memory_space<vmem>>, vector<8x256xbf16>
    tpu.vector_store %arg15[%c72, %c0_91], %160 {strides = array<i32>} : memref<200x256xbf16, #tpu.memory_space<vmem>>, vector<8x256xbf16>,
    %c0_92 = arith.constant 0 : index
    %c126 = arith.constant 126 : index
    %162 = vector.load %arg11[%c0_92, %c126] : memref<8x512xf32, #tpu.memory_space<vmem>>, vector<8x256xf32>
    %163 = vector.broadcast %20 : vector<1x256xf32> to vector<8x256xf32>
    %164 = arith.mulf %162, %163 : vector<8x256xf32>
    %165 = arith.truncf %164 : vector<8x256xf32> to vector<8x256xbf16>
    %c80 = arith.constant 80 : index
    %c0_93 = arith.constant 0 : index
    %166 = vector.load %arg15[%c80, %c0_93] : memref<200x256xbf16, #tpu.memory_space<vmem>>, vector<8x256xbf16>
    tpu.vector_store %arg15[%c80, %c0_93], %165 {strides = array<i32>} : memref<200x256xbf16, #tpu.memory_space<vmem>>, vector<8x256xbf16>,
    %c0_94 = arith.constant 0 : index
    %c127_95 = arith.constant 127 : index
    %167 = vector.load %arg11[%c0_94, %c127_95] : memref<8x512xf32, #tpu.memory_space<vmem>>, vector<8x256xf32>
    %168 = vector.broadcast %21 : vector<1x256xf32> to vector<8x256xf32>
    %169 = arith.mulf %167, %168 : vector<8x256xf32>
    %170 = arith.truncf %169 : vector<8x256xf32> to vector<8x256xbf16>
    %c88 = arith.constant 88 : index
    %c0_96 = arith.constant 0 : index
    %171 = vector.load %arg15[%c88, %c0_96] : memref<200x256xbf16, #tpu.memory_space<vmem>>, vector<8x256xbf16>
    tpu.vector_store %arg15[%c88, %c0_96], %170 {strides = array<i32>} : memref<200x256xbf16, #tpu.memory_space<vmem>>, vector<8x256xbf16>,
    %c0_97 = arith.constant 0 : index
    %c128_98 = arith.constant 128 : index
    %172 = vector.load %arg11[%c0_97, %c128_98] : memref<8x512xf32, #tpu.memory_space<vmem>>, vector<8x256xf32>
    %173 = arith.truncf %172 : vector<8x256xf32> to vector<8x256xbf16>
    %c96_99 = arith.constant 96 : index
    %c0_100 = arith.constant 0 : index
    %174 = vector.load %arg15[%c96_99, %c0_100] : memref<200x256xbf16, #tpu.memory_space<vmem>>, vector<8x256xbf16>
    tpu.vector_store %arg15[%c96_99, %c0_100], %173 {strides = array<i32>} : memref<200x256xbf16, #tpu.memory_space<vmem>>, vector<8x256xbf16>,
    %c0_101 = arith.constant 0 : index
    %c129_102 = arith.constant 129 : index
    %175 = vector.load %arg11[%c0_101, %c129_102] : memref<8x512xf32, #tpu.memory_space<vmem>>, vector<8x256xf32>
    %176 = vector.broadcast %22 : vector<1x256xf32> to vector<8x256xf32>
    %177 = arith.mulf %175, %176 : vector<8x256xf32>
    %178 = arith.truncf %177 : vector<8x256xf32> to vector<8x256xbf16>
    %c104 = arith.constant 104 : index
    %c0_103 = arith.constant 0 : index
    %179 = vector.load %arg15[%c104, %c0_103] : memref<200x256xbf16, #tpu.memory_space<vmem>>, vector<8x256xbf16>
    tpu.vector_store %arg15[%c104, %c0_103], %178 {strides = array<i32>} : memref<200x256xbf16, #tpu.memory_space<vmem>>, vector<8x256xbf16>,
    %c0_104 = arith.constant 0 : index
    %c130 = arith.constant 130 : index
    %180 = vector.load %arg11[%c0_104, %c130] : memref<8x512xf32, #tpu.memory_space<vmem>>, vector<8x256xf32>
    %181 = vector.broadcast %23 : vector<1x256xf32> to vector<8x256xf32>
    %182 = arith.mulf %180, %181 : vector<8x256xf32>
    %183 = arith.truncf %182 : vector<8x256xf32> to vector<8x256xbf16>
    %c112_105 = arith.constant 112 : index
    %c0_106 = arith.constant 0 : index
    %184 = vector.load %arg15[%c112_105, %c0_106] : memref<200x256xbf16, #tpu.memory_space<vmem>>, vector<8x256xbf16>
    tpu.vector_store %arg15[%c112_105, %c0_106], %183 {strides = array<i32>} : memref<200x256xbf16, #tpu.memory_space<vmem>>, vector<8x256xbf16>,
    %c0_107 = arith.constant 0 : index
    %c142 = arith.constant 142 : index
    %185 = vector.load %arg11[%c0_107, %c142] : memref<8x512xf32, #tpu.memory_space<vmem>>, vector<8x256xf32>
    %186 = vector.broadcast %20 : vector<1x256xf32> to vector<8x256xf32>
    %187 = arith.mulf %185, %186 : vector<8x256xf32>
    %188 = vector.broadcast %26 : vector<1x256xf32> to vector<8x256xf32>
    %189 = arith.mulf %187, %188 : vector<8x256xf32>
    %190 = arith.truncf %189 : vector<8x256xf32> to vector<8x256xbf16>
    %c120 = arith.constant 120 : index
    %c0_108 = arith.constant 0 : index
    %191 = vector.load %arg15[%c120, %c0_108] : memref<200x256xbf16, #tpu.memory_space<vmem>>, vector<8x256xbf16>
    tpu.vector_store %arg15[%c120, %c0_108], %190 {strides = array<i32>} : memref<200x256xbf16, #tpu.memory_space<vmem>>, vector<8x256xbf16>,
    %c0_109 = arith.constant 0 : index
    %c143_110 = arith.constant 143 : index
    %192 = vector.load %arg11[%c0_109, %c143_110] : memref<8x512xf32, #tpu.memory_space<vmem>>, vector<8x256xf32>
    %193 = vector.broadcast %21 : vector<1x256xf32> to vector<8x256xf32>
    %194 = arith.mulf %192, %193 : vector<8x256xf32>
    %195 = vector.broadcast %26 : vector<1x256xf32> to vector<8x256xf32>
    %196 = arith.mulf %194, %195 : vector<8x256xf32>
    %197 = arith.truncf %196 : vector<8x256xf32> to vector<8x256xbf16>
    %c128_111 = arith.constant 128 : index
    %c0_112 = arith.constant 0 : index
    %198 = vector.load %arg15[%c128_111, %c0_112] : memref<200x256xbf16, #tpu.memory_space<vmem>>, vector<8x256xbf16>
    tpu.vector_store %arg15[%c128_111, %c0_112], %197 {strides = array<i32>} : memref<200x256xbf16, #tpu.memory_space<vmem>>, vector<8x256xbf16>,
    %c0_113 = arith.constant 0 : index
    %c144_114 = arith.constant 144 : index
    %199 = vector.load %arg11[%c0_113, %c144_114] : memref<8x512xf32, #tpu.memory_space<vmem>>, vector<8x256xf32>
    %200 = vector.broadcast %26 : vector<1x256xf32> to vector<8x256xf32>
    %201 = arith.mulf %199, %200 : vector<8x256xf32>
    %202 = arith.truncf %201 : vector<8x256xf32> to vector<8x256xbf16>
    %c136 = arith.constant 136 : index
    %c0_115 = arith.constant 0 : index
    %203 = vector.load %arg15[%c136, %c0_115] : memref<200x256xbf16, #tpu.memory_space<vmem>>, vector<8x256xbf16>
    tpu.vector_store %arg15[%c136, %c0_115], %202 {strides = array<i32>} : memref<200x256xbf16, #tpu.memory_space<vmem>>, vector<8x256xbf16>,
    %c0_116 = arith.constant 0 : index
    %c145_117 = arith.constant 145 : index
    %204 = vector.load %arg11[%c0_116, %c145_117] : memref<8x512xf32, #tpu.memory_space<vmem>>, vector<8x256xf32>
    %205 = vector.broadcast %22 : vector<1x256xf32> to vector<8x256xf32>
    %206 = arith.mulf %204, %205 : vector<8x256xf32>
    %207 = vector.broadcast %26 : vector<1x256xf32> to vector<8x256xf32>
    %208 = arith.mulf %206, %207 : vector<8x256xf32>
    %209 = arith.truncf %208 : vector<8x256xf32> to vector<8x256xbf16>
    %c144_118 = arith.constant 144 : index
    %c0_119 = arith.constant 0 : index
    %210 = vector.load %arg15[%c144_118, %c0_119] : memref<200x256xbf16, #tpu.memory_space<vmem>>, vector<8x256xbf16>
    tpu.vector_store %arg15[%c144_118, %c0_119], %209 {strides = array<i32>} : memref<200x256xbf16, #tpu.memory_space<vmem>>, vector<8x256xbf16>,
    %c0_120 = arith.constant 0 : index
    %c146 = arith.constant 146 : index
    %211 = vector.load %arg11[%c0_120, %c146] : memref<8x512xf32, #tpu.memory_space<vmem>>, vector<8x256xf32>
    %212 = vector.broadcast %23 : vector<1x256xf32> to vector<8x256xf32>
    %213 = arith.mulf %211, %212 : vector<8x256xf32>
    %214 = vector.broadcast %26 : vector<1x256xf32> to vector<8x256xf32>
    %215 = arith.mulf %213, %214 : vector<8x256xf32>
    %216 = arith.truncf %215 : vector<8x256xf32> to vector<8x256xbf16>
    %c152 = arith.constant 152 : index
    %c0_121 = arith.constant 0 : index
    %217 = vector.load %arg15[%c152, %c0_121] : memref<200x256xbf16, #tpu.memory_space<vmem>>, vector<8x256xbf16>
    tpu.vector_store %arg15[%c152, %c0_121], %216 {strides = array<i32>} : memref<200x256xbf16, #tpu.memory_space<vmem>>, vector<8x256xbf16>,
    %c0_122 = arith.constant 0 : index
    %c158 = arith.constant 158 : index
    %218 = vector.load %arg11[%c0_122, %c158] : memref<8x512xf32, #tpu.memory_space<vmem>>, vector<8x256xf32>
    %219 = vector.broadcast %20 : vector<1x256xf32> to vector<8x256xf32>
    %220 = arith.mulf %218, %219 : vector<8x256xf32>
    %221 = vector.broadcast %27 : vector<1x256xf32> to vector<8x256xf32>
    %222 = arith.mulf %220, %221 : vector<8x256xf32>
    %223 = arith.truncf %222 : vector<8x256xf32> to vector<8x256xbf16>
    %c160 = arith.constant 160 : index
    %c0_123 = arith.constant 0 : index
    %224 = vector.load %arg15[%c160, %c0_123] : memref<200x256xbf16, #tpu.memory_space<vmem>>, vector<8x256xbf16>
    tpu.vector_store %arg15[%c160, %c0_123], %223 {strides = array<i32>} : memref<200x256xbf16, #tpu.memory_space<vmem>>, vector<8x256xbf16>,
    %c0_124 = arith.constant 0 : index
    %c159 = arith.constant 159 : index
    %225 = vector.load %arg11[%c0_124, %c159] : memref<8x512xf32, #tpu.memory_space<vmem>>, vector<8x256xf32>
    %226 = vector.broadcast %21 : vector<1x256xf32> to vector<8x256xf32>
    %227 = arith.mulf %225, %226 : vector<8x256xf32>
    %228 = vector.broadcast %27 : vector<1x256xf32> to vector<8x256xf32>
    %229 = arith.mulf %227, %228 : vector<8x256xf32>
    %230 = arith.truncf %229 : vector<8x256xf32> to vector<8x256xbf16>
    %c168 = arith.constant 168 : index
    %c0_125 = arith.constant 0 : index
    %231 = vector.load %arg15[%c168, %c0_125] : memref<200x256xbf16, #tpu.memory_space<vmem>>, vector<8x256xbf16>
    tpu.vector_store %arg15[%c168, %c0_125], %230 {strides = array<i32>} : memref<200x256xbf16, #tpu.memory_space<vmem>>, vector<8x256xbf16>,
    %c0_126 = arith.constant 0 : index
    %c160_127 = arith.constant 160 : index
    %232 = vector.load %arg11[%c0_126, %c160_127] : memref<8x512xf32, #tpu.memory_space<vmem>>, vector<8x256xf32>
    %233 = vector.broadcast %27 : vector<1x256xf32> to vector<8x256xf32>
    %234 = arith.mulf %232, %233 : vector<8x256xf32>
    %235 = arith.truncf %234 : vector<8x256xf32> to vector<8x256xbf16>
    %c176 = arith.constant 176 : index
    %c0_128 = arith.constant 0 : index
    %236 = vector.load %arg15[%c176, %c0_128] : memref<200x256xbf16, #tpu.memory_space<vmem>>, vector<8x256xbf16>
    tpu.vector_store %arg15[%c176, %c0_128], %235 {strides = array<i32>} : memref<200x256xbf16, #tpu.memory_space<vmem>>, vector<8x256xbf16>,
    %c0_129 = arith.constant 0 : index
    %c161 = arith.constant 161 : index
    %237 = vector.load %arg11[%c0_129, %c161] : memref<8x512xf32, #tpu.memory_space<vmem>>, vector<8x256xf32>
    %238 = vector.broadcast %22 : vector<1x256xf32> to vector<8x256xf32>
    %239 = arith.mulf %237, %238 : vector<8x256xf32>
    %240 = vector.broadcast %27 : vector<1x256xf32> to vector<8x256xf32>
    %241 = arith.mulf %239, %240 : vector<8x256xf32>
    %242 = arith.truncf %241 : vector<8x256xf32> to vector<8x256xbf16>
    %c184 = arith.constant 184 : index
    %c0_130 = arith.constant 0 : index
    %243 = vector.load %arg15[%c184, %c0_130] : memref<200x256xbf16, #tpu.memory_space<vmem>>, vector<8x256xbf16>
    tpu.vector_store %arg15[%c184, %c0_130], %242 {strides = array<i32>} : memref<200x256xbf16, #tpu.memory_space<vmem>>, vector<8x256xbf16>,
    %c0_131 = arith.constant 0 : index
    %c162 = arith.constant 162 : index
    %244 = vector.load %arg11[%c0_131, %c162] : memref<8x512xf32, #tpu.memory_space<vmem>>, vector<8x256xf32>
    %245 = vector.broadcast %23 : vector<1x256xf32> to vector<8x256xf32>
    %246 = arith.mulf %244, %245 : vector<8x256xf32>
    %247 = vector.broadcast %27 : vector<1x256xf32> to vector<8x256xf32>
    %248 = arith.mulf %246, %247 : vector<8x256xf32>
    %249 = arith.truncf %248 : vector<8x256xf32> to vector<8x256xbf16>
    %c192 = arith.constant 192 : index
    %c0_132 = arith.constant 0 : index
    %250 = vector.load %arg15[%c192, %c0_132] : memref<200x256xbf16, #tpu.memory_space<vmem>>, vector<8x256xbf16>
    tpu.vector_store %arg15[%c192, %c0_132], %249 {strides = array<i32>} : memref<200x256xbf16, #tpu.memory_space<vmem>>, vector<8x256xbf16>,
    %c0_133 = arith.constant 0 : index
    %c0_134 = arith.constant 0 : index
    %251 = vector.load %arg4[%c0_133, %c0_134] : memref<8x200xbf16, #tpu.memory_space<vmem>>, vector<8x200xbf16>
    %c0_135 = arith.constant 0 : index
    %c0_136 = arith.constant 0 : index
    %252 = vector.load %arg15[%c0_135, %c0_136] : memref<200x256xbf16, #tpu.memory_space<vmem>>, vector<200x256xbf16>
    %cst_137 = arith.constant dense<0.000000e+00> : vector<8x256xf32>
    %253 = tpu.matmul %251, %252, %cst_137 {dimension_numbers = #tpu.dot_dimension_numbers<[1], [0], [0], [1], [0, 0, 1, 1], [], []>} : vector<8x200xbf16>, vector<200x256xbf16>, vector<8x256xf32> -> vector<8x256xf32>
    %254 = vector.extract_strided_slice %2 {offsets = [40, 0], sizes = [8, 1], strides = [1, 1]} : vector<56x1xf32> to vector<8x1xf32>
    %255 = vector.broadcast %254 : vector<8x1xf32> to vector<8x256xf32>
    %256 = arith.mulf %253, %255 : vector<8x256xf32>
    %257 = vector.extract_strided_slice %3 {offsets = [40, 0], sizes = [8, 1], strides = [1, 1]} : vector<56x1xf32> to vector<8x1xf32>
    %258 = vector.broadcast %257 : vector<8x1xf32> to vector<8x256xf32>
    %259 = arith.addf %256, %258 : vector<8x256xf32>
    %cst_138 = arith.constant 0.000000e+00 : f32
    %260 = vector.broadcast %cst_138 : f32 to vector<8x128xf32>
    %c0_139 = arith.constant 0 : index
    %c0_140 = arith.constant 0 : index
    %261 = vector.load %arg12[%c0_139, %c0_140] : memref<8x512xf32, #tpu.memory_space<vmem>>, vector<8x128xf32>
    tpu.vector_store %arg12[%c0_139, %c0_140], %260 {strides = array<i32>} : memref<8x512xf32, #tpu.memory_space<vmem>>, vector<8x128xf32>,
    %c0_141 = arith.constant 0 : index
    %c128_142 = arith.constant 128 : index
    %262 = vector.load %arg12[%c0_141, %c128_142] : memref<8x512xf32, #tpu.memory_space<vmem>>, vector<8x256xf32>
    tpu.vector_store %arg12[%c0_141, %c128_142], %19 {strides = array<i32>} : memref<8x512xf32, #tpu.memory_space<vmem>>, vector<8x256xf32>,
    %c0_143 = arith.constant 0 : index
    %c384_144 = arith.constant 384 : index
    %263 = vector.load %arg12[%c0_143, %c384_144] : memref<8x512xf32, #tpu.memory_space<vmem>>, vector<8x128xf32>
    tpu.vector_store %arg12[%c0_143, %c384_144], %260 {strides = array<i32>} : memref<8x512xf32, #tpu.memory_space<vmem>>, vector<8x128xf32>,
    %c0_145 = arith.constant 0 : index
    %c127_146 = arith.constant 127 : index
    %264 = vector.load %arg12[%c0_145, %c127_146] : memref<8x512xf32, #tpu.memory_space<vmem>>, vector<8x256xf32>
    %265 = vector.broadcast %21 : vector<1x256xf32> to vector<8x256xf32>
    %266 = arith.mulf %264, %265 : vector<8x256xf32>
    %267 = arith.addf %19, %266 : vector<8x256xf32>
    %c0_147 = arith.constant 0 : index
    %c129_148 = arith.constant 129 : index
    %268 = vector.load %arg12[%c0_147, %c129_148] : memref<8x512xf32, #tpu.memory_space<vmem>>, vector<8x256xf32>
    %269 = vector.broadcast %22 : vector<1x256xf32> to vector<8x256xf32>
    %270 = arith.mulf %268, %269 : vector<8x256xf32>
    %271 = arith.addf %267, %270 : vector<8x256xf32>
    %cst_149 = arith.constant 0.000000e+00 : f32
    %272 = vector.broadcast %cst_149 : f32 to vector<8x128xf32>
    %c0_150 = arith.constant 0 : index
    %c0_151 = arith.constant 0 : index
    %273 = vector.load %arg13[%c0_150, %c0_151] : memref<8x512xf32, #tpu.memory_space<vmem>>, vector<8x128xf32>
    tpu.vector_store %arg13[%c0_150, %c0_151], %272 {strides = array<i32>} : memref<8x512xf32, #tpu.memory_space<vmem>>, vector<8x128xf32>,
    %c0_152 = arith.constant 0 : index
    %c128_153 = arith.constant 128 : index
    %274 = vector.load %arg13[%c0_152, %c128_153] : memref<8x512xf32, #tpu.memory_space<vmem>>, vector<8x256xf32>
    tpu.vector_store %arg13[%c0_152, %c128_153], %271 {strides = array<i32>} : memref<8x512xf32, #tpu.memory_space<vmem>>, vector<8x256xf32>,
    %c0_154 = arith.constant 0 : index
    %c384_155 = arith.constant 384 : index
    %275 = vector.load %arg13[%c0_154, %c384_155] : memref<8x512xf32, #tpu.memory_space<vmem>>, vector<8x128xf32>
    tpu.vector_store %arg13[%c0_154, %c384_155], %272 {strides = array<i32>} : memref<8x512xf32, #tpu.memory_space<vmem>>, vector<8x128xf32>,
    %c0_156 = arith.constant 0 : index
    %c112_157 = arith.constant 112 : index
    %276 = vector.load %arg13[%c0_156, %c112_157] : memref<8x512xf32, #tpu.memory_space<vmem>>, vector<8x256xf32>
    %277 = vector.broadcast %25 : vector<1x256xf32> to vector<8x256xf32>
    %278 = arith.mulf %276, %277 : vector<8x256xf32>
    %279 = arith.addf %271, %278 : vector<8x256xf32>
    %c0_158 = arith.constant 0 : index
    %c144_159 = arith.constant 144 : index
    %280 = vector.load %arg13[%c0_158, %c144_159] : memref<8x512xf32, #tpu.memory_space<vmem>>, vector<8x256xf32>
    %281 = vector.broadcast %26 : vector<1x256xf32> to vector<8x256xf32>
    %282 = arith.mulf %280, %281 : vector<8x256xf32>
    %283 = arith.addf %279, %282 : vector<8x256xf32>
    %284 = vector.extract_strided_slice %2 {offsets = [48, 0], sizes = [8, 1], strides = [1, 1]} : vector<56x1xf32> to vector<8x1xf32>
    %285 = vector.broadcast %284 : vector<8x1xf32> to vector<8x256xf32>
    %286 = arith.mulf %283, %285 : vector<8x256xf32>
    %287 = vector.extract_strided_slice %3 {offsets = [48, 0], sizes = [8, 1], strides = [1, 1]} : vector<56x1xf32> to vector<8x1xf32>
    %288 = vector.broadcast %287 : vector<8x1xf32> to vector<8x256xf32>
    %289 = arith.addf %286, %288 : vector<8x256xf32>
    %cst_160 = arith.constant 0.000000e+00 : f32
    %290 = vector.broadcast %cst_160 : f32 to vector<8x256xf32>
    %291 = arith.maximumf %12, %290 : vector<8x256xf32>
    %c0_161 = arith.constant 0 : index
    %c0_162 = arith.constant 0 : index
    %c0_163 = arith.constant 0 : index
    %292 = vector.load %arg9[%c0_161, %c0_162, %c0_163] : memref<1x32x256xf32, #tpu.memory_space<vmem>>, vector<1x8x256xf32>
    %293 = vector.shape_cast %292 : vector<1x8x256xf32> to vector<8x256xf32>
    %294 = vector.shape_cast %291 : vector<8x256xf32> to vector<1x8x256xf32>
    tpu.vector_store %arg9[%c0_161, %c0_162, %c0_163], %294 {strides = array<i32>} : memref<1x32x256xf32, #tpu.memory_space<vmem>>, vector<1x8x256xf32>,
    %cst_164 = arith.constant 0.000000e+00 : f32
    %295 = vector.broadcast %cst_164 : f32 to vector<8x256xf32>
    %296 = arith.maximumf %91, %295 : vector<8x256xf32>
    %c0_165 = arith.constant 0 : index
    %c8_166 = arith.constant 8 : index
    %c0_167 = arith.constant 0 : index
    %297 = vector.load %arg9[%c0_165, %c8_166, %c0_167] : memref<1x32x256xf32, #tpu.memory_space<vmem>>, vector<1x8x256xf32>
    %298 = vector.shape_cast %297 : vector<1x8x256xf32> to vector<8x256xf32>
    %299 = vector.shape_cast %296 : vector<8x256xf32> to vector<1x8x256xf32>
    tpu.vector_store %arg9[%c0_165, %c8_166, %c0_167], %299 {strides = array<i32>} : memref<1x32x256xf32, #tpu.memory_space<vmem>>, vector<1x8x256xf32>,
    %cst_168 = arith.constant 0.000000e+00 : f32
    %300 = vector.broadcast %cst_168 : f32 to vector<8x256xf32>
    %301 = arith.maximumf %259, %300 : vector<8x256xf32>
    %c0_169 = arith.constant 0 : index
    %c16_170 = arith.constant 16 : index
    %c0_171 = arith.constant 0 : index
    %302 = vector.load %arg9[%c0_169, %c16_170, %c0_171] : memref<1x32x256xf32, #tpu.memory_space<vmem>>, vector<1x8x256xf32>
    %303 = vector.shape_cast %302 : vector<1x8x256xf32> to vector<8x256xf32>
    %304 = vector.shape_cast %301 : vector<8x256xf32> to vector<1x8x256xf32>
    tpu.vector_store %arg9[%c0_169, %c16_170, %c0_171], %304 {strides = array<i32>} : memref<1x32x256xf32, #tpu.memory_space<vmem>>, vector<1x8x256xf32>,
    %cst_172 = arith.constant 0.000000e+00 : f32
    %305 = vector.broadcast %cst_172 : f32 to vector<8x256xf32>
    %306 = arith.maximumf %289, %305 : vector<8x256xf32>
    %c0_173 = arith.constant 0 : index
    %c24_174 = arith.constant 24 : index
    %c0_175 = arith.constant 0 : index
    %307 = vector.load %arg9[%c0_173, %c24_174, %c0_175] : memref<1x32x256xf32, #tpu.memory_space<vmem>>, vector<1x8x256xf32>
    %308 = vector.shape_cast %307 : vector<1x8x256xf32> to vector<8x256xf32>
    %309 = vector.shape_cast %306 : vector<8x256xf32> to vector<1x8x256xf32>
    tpu.vector_store %arg9[%c0_173, %c24_174, %c0_175], %309 {strides = array<i32>} : memref<1x32x256xf32, #tpu.memory_space<vmem>>, vector<1x8x256xf32>,
    return
  }
  func.func @transform_0(%arg0: i32) -> (i32, i32, i32) {
    %c0_i32 = arith.constant 0 : i32
    %c0_i32_0 = arith.constant 0 : i32
    %c0_i32_1 = arith.constant 0 : i32
    return %arg0, %c0_i32, %c0_i32_0 : i32, i32, i32
  }
  func.func @transform_1(%arg0: i32) -> (i32, i32) {
    %c0_i32 = arith.constant 0 : i32
    %c0_i32_0 = arith.constant 0 : i32
    %c0_i32_1 = arith.constant 0 : i32
    return %c0_i32, %c0_i32_0 : i32, i32
  }
  func.func @transform_2(%arg0: i32) -> (i32, i32) {
    %c0_i32 = arith.constant 0 : i32
    %c0_i32_0 = arith.constant 0 : i32
    %c0_i32_1 = arith.constant 0 : i32
    return %c0_i32, %c0_i32_0 : i32, i32
  }
  func.func @transform_3(%arg0: i32) -> (i32, i32) {
    %c0_i32 = arith.constant 0 : i32
    %c0_i32_0 = arith.constant 0 : i32
    %c0_i32_1 = arith.constant 0 : i32
    return %c0_i32, %c0_i32_0 : i32, i32
  }
  func.func @transform_4(%arg0: i32) -> (i32, i32) {
    %c0_i32 = arith.constant 0 : i32
    %c0_i32_0 = arith.constant 0 : i32
    %c0_i32_1 = arith.constant 0 : i32
    return %c0_i32, %c0_i32_0 : i32, i32
  }
  func.func @transform_5(%arg0: i32) -> (i32, i32) {
    %c0_i32 = arith.constant 0 : i32
    %c0_i32_0 = arith.constant 0 : i32
    %c0_i32_1 = arith.constant 0 : i32
    return %c0_i32, %c0_i32_0 : i32, i32
  }
  func.func @transform_6(%arg0: i32) -> (i32, i32) {
    %c0_i32 = arith.constant 0 : i32
    %c0_i32_0 = arith.constant 0 : i32
    %c0_i32_1 = arith.constant 0 : i32
    return %c0_i32, %c0_i32_0 : i32, i32
  }
  func.func @transform_7(%arg0: i32) -> (i32, i32) {
    %c0_i32 = arith.constant 0 : i32
    %c0_i32_0 = arith.constant 0 : i32
    %c0_i32_1 = arith.constant 0 : i32
    return %c0_i32, %c0_i32_0 : i32, i32
  }
  func.func @transform_8(%arg0: i32) -> (i32, i32, i32) {
    %c0_i32 = arith.constant 0 : i32
    %c0_i32_0 = arith.constant 0 : i32
    %c0_i32_1 = arith.constant 0 : i32
    return %arg0, %c0_i32, %c0_i32_0 : i32, i32, i32
  }
}

</mosaic_0001>

<bundles_post_ra>
// kernel: tpu_custom_call.1
= control target key start
LH: loop header
LB: loop body
LE: loop exit
PB: predicated region body
PF: predicated region fallthrough
CT: control target
= control target key end

     0   :  { %13 = vsyncpa [#allocation9], 0  ;;  %s4007_s0 = inlined_call_operand.vmem [shape: bf16[2,4,256], index: 0, kind: input, shape index: {}]   ;;  %s4008_s1 = inlined_call_operand.vmem [shape: bf16[32,4], index: 1, kind: input, shape index: {}]   ;;  %s4009_s2 = inlined_call_operand.vmem [shape: bf16[8,72], index: 2, kind: input, shape index: {}]   ;;  %s4010_s3 = inlined_call_operand.vmem [shape: bf16[8,200], index: 3, kind: input, shape index: {}]   ;;  %s4011_s4 = inlined_call_operand.vmem [shape: f32[56,1], index: 4, kind: input, shape index: {}]   ;;  %s4012_s5 = inlined_call_operand.vmem [shape: f32[56,1], index: 5, kind: input, shape index: {}]   ;;  %s4013_s6 = inlined_call_operand.vmem [shape: f32[4,256], index: 6, kind: input, shape index: {}]   ;;  %s4014_s7 = inlined_call_operand.vmem [shape: f32[4,256], index: 7, kind: input, shape index: {}]   ;;  %s4015_s8 = inlined_call_operand.hbm [shape: f32[2,32,256], index: 8, kind: output, shape index: {}]  }
   0x1   :  { %15 = vsyncpa [#allocation9 + $0x1], 0  ;;  %s2826_s27 = smov 0   ;;  %s2828_s28 = smov 0  }
   0x2   :  { %s2830_s29 = smov 0   ;;  %s2832_s30 = smov 0  }
   0x3 LB: > { %s2847_s9 = sadd.s32 4294967295, %s2752_s30   ;;  %s2419_s10 = sadd.s32 4294967294, %s2752_s30   ;;  %s2752_s30 = sphi %s2832_s30, %s4197_s30   ;;  %s2748_s29 = sphi %s2830_s29, %s4196_s29   ;;  %s2744_s28 = sphi %s2828_s28, %s4195_s28   ;;  %s2740_s27 = sphi %s2826_s27, %s4194_s27  }
   0x4   : > { %s2851_s11 = sadd.s32 1, %s2752_s30   ;;  %s201_s12 = sadd.s32 1, %s2748_s29 }
   0x5   : > { %s198_s13 = ssub.s32 %s2752_s30, %s2851_s11  ;;  %p211_p0 = scmp.ne.s32.totalorder %s2748_s29, %s2744_s28 }
   0x6   : > { %p199_p1 = scmp.eq.s32.totalorder %s198_s13, 0  ;;  %p212_p2 = scmp.eq.s32.totalorder %s2847_s9, 1 }
   0x7   : > { %p217_p3 = scmp.ne.s32.totalorder %s2744_s28, %s2740_s27  ;;  %p218_p4 = scmp.eq.s32.totalorder %s2419_s10, 1 }
   0x8   : > { %s2862_s14 = scalar_select %p199_p1, %s2748_s29, %s201_s12  }
   0x9   : > { %p2864_p5 = por %p212_p2, %p211_p0  ;;  %p2868_p6 = por %p218_p4, %p217_p3 }
   0xa   : > { %p2422_p7 = scmp.ge.s32.totalorder %s2752_s30, 1  ;;  %p265_p8 = scmp.lt.s32.totalorder %s2752_s30, 3 }
   0xc   : > { %p266_p9 = pnand %p2422_p7, %p265_p8 }
   0xe   : > { %269 = sbr.rel (%p266_p9) target bundleno = 791 (0x317), region = 52 }
  0x15   : > { %v308_v0 = vld [vmem:[%s4011_s4 + $0x10] sm:$0xff]  ;;  %v492_v1 = vlaneseq  ;;  %v2754_v2 = vmov 0   ;;  %v470_v3 = vld [vmem:[%s4013_s6] ss:$4 sm:$0x3]  ;;  %p299_p10 = scmp.lt.s32.totalorder %s2847_s9, 1 }
  0x16   : > { %2684 = vset.pattern.permute.xlu0 %v2754_v2  ;;  %389 = vmatprep.mubr.bf16.mxu1 %v2754_v2  ;;  %v315_v5 = vld [vmem:[%s4012_s5 + $0x10] sm:$0xff]  ;;  %v2432_v6 = vld [vmem:[%s4013_s6 + $0x1] ss:$4 sm:$0x3]  ;;  %vm350_vm0 = vcmask 1041408   ;;  %s4016_s19 = smov 94  }
  0x17   : > { %422 = vperm.xlu0 %2684, %v308_v0   ;;  %v493_v4 = vshrl.u32 %v492_v1, 7  ;;  %2685 = vset.pattern.permute.xlu1 %v2754_v2  ;;  %s300_s23 = scalar_select %p299_p10, %s2847_s9, 1  ;;  %v477_v11 = vld [vmem:[%s4014_s7] ss:$4 sm:$0x3]  ;;  %vm343_vm1 = vcmask 31744  }
  0x18   : > { %s4018_s20 = smov 95   ;;  %v2686_v16 = vld [vmem:[%s4008_s1] sm:$0xff]   ;;  %v2687_v21 = vld [vmem:[%s4008_s1 + $0x8] sm:$0xff]   ;;  %s4022_s10 = smov 97   ;;  %vm4068_vm2 = vcmask 908288   ;;  %vm562_vm3 = vcmask 916480  }
  0x19   : > { %v2888_v7 = vsub.s32 0, %v493_v4  ;;  %v2890_v8 = vsub.s32 1, %v493_v4  ;;  %s2551_s26 = sshll.u32 %s300_s23, 2  ;;  %v2433_v19 = vld [vmem:[%s4013_s6 + $0x2] ss:$4 sm:$0x3] }
  0x1a   : > { %s303_s13 = scalar_lea.vmem %s4007_s0, %s2551_s26  ;;  %s4020_s12 = smov 96   ;;  %v2434_v24 = vld [vmem:[%s4013_s6 + $0x3] ss:$4 sm:$0x3]  ;;  %v307_v30 = vld [vmem:[%s4011_s4 + $0x8] sm:$0xff]  ;;  %vm4082_vm4 = vcmask 924672  }
  0x1b   : > { %450 = vperm.xlu0 %2684, %v315_v5   ;;  %v2893_v9 = vrot.slane %v470_v3, %v2888_v7  ;;  %v2899_v10 = vrot.slane %v2432_v6, %v2888_v7  ;;  %v2428_v12 = vld.sshfl [vmem:[%s303_s13] sm:$0x33 pattern:$0x76325410]  ;;  %v2907_v15 = vrot.slane %v470_v3, %v2890_v8  ;;  %v1029_v17 = vrot.slane %v477_v11, %v2888_v7  ;;  %s4024_s18 = smov 98   ;;  %s4026_s21 = smov 110  }
  0x1c   : > { %v342_v13 = vcombine.high %v2428_v12, %v2428_v12  ;;  %v352_v14 = vsel %vm350_vm0, %v2428_v12, 0  ;;  %v2918_v18 = vrot.slane %v2432_v6, %v2890_v8  ;;  %v1033_v20 = vrot.slane %v477_v11, %v2890_v8  ;;  %v2435_v27 = vld [vmem:[%s4014_s7 + $0x1] ss:$4 sm:$0x3]  ;;  %s4028_s24 = smov 111   ;;  %s2762_s25 = smov 112  }
  0x1d   : > { %1013 = vrot.lane.b32.xlu1 %v2893_v9, %s4016_s19  ;;  %v2932_v22 = vrot.slane %v2433_v19, %v2888_v7  ;;  %v2939_v23 = vrot.slane %v2433_v19, %v2890_v8  ;;  %v2949_v25 = vrot.slane %v2434_v24, %v2888_v7  ;;  %v2956_v26 = vrot.slane %v2434_v24, %v2890_v8  ;;  %s4056_s26 = smov 113   ;;  %s4064_s13 = smov 114   ;;  %v314_v31 = vld [vmem:[%s4012_s5 + $0x8] sm:$0xff]  ;;  %v2436_v32 = vld [vmem:[%s4014_s7 + $0x2] ss:$4 sm:$0x3] }
  0x1e   : > { %2429 = vmatprep.subr.msk.bf16.mxu1 %vm350_vm0, %v342_v13  ;;  %v516_v28 = vrot.slane %v2435_v27, %v2888_v7  ;;  %v520_v29 = vrot.slane %v2435_v27, %v2890_v8  ;;  %s4032_s17 = smov 1   ;;  %v753_v33 = vrot.slane %v2436_v32, %v2888_v7  ;;  %v757_v34 = vrot.slane %v2436_v32, %v2890_v8  ;;  %s2770_s22 = smov 15   ;;  %v2437_v41 = vld [vmem:[%s4014_s7 + $0x3] ss:$4 sm:$0x3] }
  0x1f   : > { %1070 = vrot.lane.b32.xlu0 %v2899_v10, %s4018_s20  ;;  %358 = vmatpush1.bf16.msra.mxu1 %v352_v14  ;;  %s2771_s23 = smov 16   ;;  %v1781_v44 = vrot.slane %v2437_v41, %v2888_v7  ;;  %v1785_v47 = vrot.slane %v2437_v41, %v2890_v8  ;;  %vm4067_vm5 = vcmask 785408   ;;  %vm1436_vm6 = vcmask 113664  }
  0x20   : > { %vm645_vm7 = vcmask 121856   ;;  %vm682_vm8 = vcmask 7168   ;;  %vm588_vm9 = vcmask 130048   ;;  %vm1447_vm10 = vcmask 1031168  }
  0x21   : > { %1015 = vrot.lane.b32.xlu1 %v2907_v15, %s4016_s19  ;;  %vm4069_vm11 = vcmask 15360   ;;  %vm656_vm12 = vcmask 1039360   ;;  %vm551_vm13 = vcmask 138240   ;;  %vm1301_vm14 = vcmask 146432  }
  0x22   : > { %2430 = vmatmul.mubr.msk.bf16.vlgmr.msra.gmra.mrb[0].mxu1 %vm343_vm1, %v2686_v16  ;;  %vm4076_vm15 = vcmask 769024   ;;  %vm4078_vm0 = vcmask 777216  }
  0x23   : > { %1034 = vrot.lane.b32.xlu0 %v1029_v17, %s4016_s19  ;;  %399 = vmatprep.mubr.bf16.mxu1 %v2754_v2 }
  0x25   : > { %1072 = vrot.lane.b32.xlu1 %v2918_v18, %s4018_s20 }
  0x27   : > { %1082 = vrot.lane.b32.xlu0 %v1029_v17, %s4018_s20 }
  0x29   : > { %1036 = vrot.lane.b32.xlu1 %v1033_v20, %s4016_s19  ;;  %s4030_s19 = smov 14  }
  0x2a   : > { %2431 = vmatmul.mubr.msk.bf16.gmra.mrb[4].mxu1 %vm343_vm1, %v2687_v21  ;;  %vm4079_vm1 = vcmask 793600  }
  0x2b   : > { %1155 = vrot.lane.b32.xlu0 %v2932_v22, %s4022_s10  ;;  %974 = vmatprep.mubr.bf16.mxu1 %v2754_v2 }
  0x2d   : > { %1084 = vrot.lane.b32.xlu1 %v1033_v20, %s4018_s20  ;;  %s2765_s20 = smov 127  }
  0x2f   : > { %1118 = vrot.lane.b32.xlu0 %v1029_v17, %s4020_s12 }
  0x31   : > { %1157 = vrot.lane.b32.xlu1 %v2939_v23, %s4022_s10 }
  0x33   : > { %1167 = vrot.lane.b32.xlu0 %v1029_v17, %s4022_s10 }
  0x35   : > { %1120 = vrot.lane.b32.xlu1 %v1033_v20, %s4020_s12  ;;  %s2766_s12 = smov 126  }
  0x37   : > { %1212 = vrot.lane.b32.xlu0 %v2949_v25, %s4024_s18 }
  0x39   : > { %1169 = vrot.lane.b32.xlu1 %v1033_v20, %s4022_s10  ;;  %s4034_s10 = smov 2  }
  0x3b   : > { %1260 = vrot.lane.b32.xlu0 %v2893_v9, %s4026_s21 }
  0x3d   : > { %1214 = vrot.lane.b32.xlu1 %v2956_v26, %s4024_s18 }
  0x3f   : > { %1224 = vrot.lane.b32.xlu0 %v1029_v17, %s4024_s18 }
  0x41   : > { %1262 = vrot.lane.b32.xlu1 %v2907_v15, %s4026_s21 }
  0x43   : > { %1272 = vrot.lane.b32.xlu0 %v516_v28, %s4026_s21 }
  0x45   : > { %1226 = vrot.lane.b32.xlu1 %v1033_v20, %s4024_s18  ;;  %s2772_s18 = smov 17  }
  0x47   : > { %500 = vrot.lane.b32.xlu0 %v2899_v10, %s4028_s24 }
  0x49   : > { %1274 = vrot.lane.b32.xlu1 %v520_v29, %s4026_s21  ;;  %s4036_s21 = smov 18  }
  0x4b   : > { %521 = vrot.lane.b32.xlu0 %v516_v28, %s4028_s24 }
  0x4d   : > { %502 = vrot.lane.b32.xlu1 %v2918_v18, %s4028_s24 }
  0x4f   : > { %558 = vrot.lane.b32.xlu0 %v516_v28, %s2762_s25 }
  0x51   : > { %523 = vrot.lane.b32.xlu1 %v520_v29, %s4028_s24  ;;  %s2774_s24 = smov 30  }
  0x53   : > { %604 = vrot.lane.b32.xlu0 %v2932_v22, %s4056_s26 }
  0x55   : > { %560 = vrot.lane.b32.xlu1 %v520_v29, %s2762_s25 }
  0x57   : > { %1395 = vrot.lane.b32.xlu0 %v2949_v25, %s4064_s13 }
  0x59   : > { %606 = vrot.lane.b32.xlu1 %v2939_v23, %s4056_s26 }
  0x5b   : > { %616 = vrot.lane.b32.xlu0 %v516_v28, %s4056_s26 }
  0x5d   : > { %1397 = vrot.lane.b32.xlu1 %v2956_v26, %s4064_s13 }
  0x5f   : > { %1407 = vrot.lane.b32.xlu0 %v516_v28, %s4064_s13 }
  0x61   : > { %618 = vrot.lane.b32.xlu1 %v520_v29, %s4056_s26 }
  0x63   : > { %417 = vperm.xlu0 %2684, %v307_v30  }
  0x65   : > { %1409 = vrot.lane.b32.xlu1 %v520_v29, %s4064_s13 }
  0x67   : > { %652 = vrot.lane.b32.xlu0 %v2899_v10, %s2765_s20 }
  0x69   : > { %445 = vperm.xlu1 %2685, %v314_v31  }
  0x6b   : > { %1443 = vrot.lane.b32.xlu0 %v2893_v9, %s2766_s12 }
  0x6d   : > { %654 = vrot.lane.b32.xlu1 %v2918_v18, %s2765_s20 }
  0x6f   : > { %700 = vrot.lane.b32.xlu0 %v2932_v22, %s4032_s17 }
  0x71   : > { %1445 = vrot.lane.b32.xlu1 %v2907_v15, %s2766_s12 }
  0x73   : > { %1582 = vrot.lane.b32.xlu0 %v2893_v9, %s4030_s19 }
  0x75   : > { %702 = vrot.lane.b32.xlu1 %v2939_v23, %s4032_s17  ;;  %s2776_s17 = smov 33  }
  0x77   : > { %1545 = vrot.lane.b32.xlu0 %v2949_v25, %s4034_s10 }
  0x79   : > { %1584 = vrot.lane.b32.xlu1 %v2907_v15, %s4030_s19 }
  0x7b   : > { %1594 = vrot.lane.b32.xlu0 %v753_v33, %s4030_s19 }
  0x7d   : > { %1547 = vrot.lane.b32.xlu1 %v2956_v26, %s4034_s10  ;;  %s2775_s10 = smov 31  }
  0x7f   : > { %737 = vrot.lane.b32.xlu0 %v2899_v10, %s2770_s22 }
  0x81   : > { %1596 = vrot.lane.b32.xlu1 %v757_v34, %s4030_s19  ;;  %s2777_s19 = smov 32  }
  0x83   : > { %758 = vrot.lane.b32.xlu0 %v753_v33, %s2770_s22 }
  0x85   : > { %739 = vrot.lane.b32.xlu1 %v2918_v18, %s2770_s22 }
  0x87   : > { %794 = vrot.lane.b32.xlu0 %v753_v33, %s2771_s23 }
  0x89   : > { %760 = vrot.lane.b32.xlu1 %v757_v34, %s2770_s22 }
  0x8b   : > { %831 = vrot.lane.b32.xlu0 %v2932_v22, %s2772_s18 }
  0x8d   : > { %796 = vrot.lane.b32.xlu1 %v757_v34, %s2771_s23 }
  0x8f   : > { %v3036_v35 = vpop.permute.xlu1 %1013  ;;  %1717 = vrot.lane.b32.xlu0 %v2949_v25, %s4036_s21 }
  0x91   : > { %833 = vrot.lane.b32.xlu1 %v2939_v23, %s2772_s18 }
  0x93   : > { %v3042_v36 = vpop.permute.xlu1 %1015  ;;  %843 = vrot.lane.b32.xlu0 %v753_v33, %s2772_s18 }
  0x95   : > { %1719 = vrot.lane.b32.xlu1 %v2956_v26, %s4036_s21 }
  0x96   : > { %v3047_v37 = vpop.permute.xlu0 %422 }
  0x97   : > { %v3049_v38 = vpop.permute.xlu1 %1072  ;;  %1729 = vrot.lane.b32.xlu0 %v753_v33, %s4036_s21 }
  0x99   : > { %845 = vrot.lane.b32.xlu1 %v757_v34, %s2772_s18 }
  0x9a   : > { %v3053_v39 = vpop.permute.xlu0 %450 }
  0x9b   : > { %v3055_v40 = vpop.permute.xlu1 %1036  ;;  %1765 = vrot.lane.b32.xlu0 %v2893_v9, %s2774_s24 }
  0x9d   : > { %1731 = vrot.lane.b32.xlu1 %v757_v34, %s4036_s21  ;;  %s2778_s21 = smov 34  }
  0x9e   : > { %v3063_v42 = vpop.permute.xlu0 %1070 }
  0x9f   : > { %v3065_v43 = vpop.permute.xlu1 %1084  ;;  %1822 = vrot.lane.b32.xlu0 %v2899_v10, %s2775_s10 }
  0xa1   : > { %1767 = vrot.lane.b32.xlu1 %v2907_v15, %s2774_s24 }
  0xa2   : > { %v3072_v45 = vpop.permute.xlu0 %1034 }
  0xa3   : > { %v3074_v46 = vpop.permute.xlu1 %1157  ;;  %1786 = vrot.lane.b32.xlu0 %v1781_v44, %s2774_s24 }
  0xa5   : > { %1824 = vrot.lane.b32.xlu1 %v2918_v18, %s2775_s10 }
  0xa6   : > { %v3080_v48 = vpop.permute.xlu0 %1082 }
  0xa7   : > { %v3082_v49 = vpop.permute.xlu1 %1120  ;;  %1834 = vrot.lane.b32.xlu0 %v1781_v44, %s2775_s10 }
  0xa9   : > { %1788 = vrot.lane.b32.xlu1 %v1785_v47, %s2774_s24 }
  0xaa   : > { %v3086_v50 = vpop.permute.xlu0 %1155 }
  0xab   : > { %v3088_v51 = vpop.permute.xlu1 %1169  ;;  %1907 = vrot.lane.b32.xlu0 %v2932_v22, %s2776_s17 }
  0xad   : > { %1836 = vrot.lane.b32.xlu1 %v1785_v47, %s2775_s10 }
  0xae   : > { %v3093_v52 = vpop.permute.xlu0 %1118 }
  0xaf   : > { %v3095_v53 = vpop.permute.xlu1 %1214  ;;  %1870 = vrot.lane.b32.xlu0 %v1781_v44, %s2777_s19 }
  0xb1   : > { %1909 = vrot.lane.b32.xlu1 %v2939_v23, %s2776_s17 }
  0xb2   : > { %v3100_v54 = vpop.permute.xlu0 %1167 }
  0xb3   : > { %v3102_v55 = vpop.permute.xlu1 %1262  ;;  %1919 = vrot.lane.b32.xlu0 %v1781_v44, %s2776_s17 }
  0xb4   : > { %4086 = vst [vmem:[#allocation11_spill] sm:$0xff] %v3102_v55 }
  0xb5   : > { %1872 = vrot.lane.b32.xlu1 %v1785_v47, %s2777_s19 }
  0xb6   : > { %v3106_v56 = vpop.permute.xlu0 %1212 }
  0xb7   : > { %v3108_v57 = vpop.permute.xlu1 %1226  ;;  %1955 = vrot.lane.b32.xlu0 %v2949_v25, %s2778_s21 }
  0xb9   : > { %1921 = vrot.lane.b32.xlu1 %v1785_v47, %s2776_s17 }
  0xba   : > { %v3113_v58 = vpop.permute.xlu0 %1260 }
  0xbb   : > { %4087 = vst [vmem:[#allocation12_spill] sm:$0xff] %v3113_v58  ;;  %v3115_v59 = vpop.permute.xlu1 %1274  ;;  %1967 = vrot.lane.b32.xlu0 %v1781_v44, %s2778_s21 }
  0xbc   : > { %4088 = vst [vmem:[#allocation13_spill] sm:$0xff] %v3115_v59 }
  0xbd   : > { %1957 = vrot.lane.b32.xlu1 %v2956_v26, %s2778_s21 }
  0xbe   : > { %v3120_v60 = vpop.permute.xlu0 %1224 }
  0xbf   : > { %v3122_v61 = vpop.permute.xlu1 %502 }
  0xc1   : > { %1969 = vrot.lane.b32.xlu1 %v1785_v47, %s2778_s21 }
  0xc2   : > { %v3125_v62 = vpop.permute.xlu0 %1272 }
  0xc3   : > { %4089 = vst [vmem:[#allocation14_spill] sm:$0xff] %v3125_v62  ;;  %v3127_v63 = vpop.permute.xlu1 %523 }
  0xc6   : > { %v501_v0 = vpop.permute.xlu0 %500 }
  0xc7   : > { %v3131_v2 = vpop.permute.xlu1 %560  ;;  %v3184_v33 = vsel %vm4068_vm2, %v501_v0, %v3122_v61  ;;  %v509_v34 = vmul.f32 0.0, %v501_v0 }
  0xc8   : > { %4090 = vst [vmem:[#allocation15_spill] sm:$0xff] %v3131_v2  ;;  %4100 = vst [vmem:[#allocation25_spill] sm:$0xff] %v3184_v33 }
  0xca   : > { %v3129_v1 = vpop.permute.xlu0 %521 }
  0xcb   : > { %v3133_v4 = vpop.permute.xlu1 %606 }
  0xce   : > { %v559_v3 = vpop.permute.xlu0 %558 }
  0xcf   : > { %v3139_v7 = vpop.permute.xlu1 %1397  ;;  %v3191_v47 = vsel %vm562_vm3, %v559_v3, %v3131_v2 }
  0xd0   : > { %4092 = vst [vmem:[#allocation17_spill] sm:$0xff] %v3139_v7  ;;  %4101 = vst [vmem:[#allocation26_spill] sm:$0xff] %v3191_v47 }
  0xd2   : > { %v3135_v5 = vpop.permute.xlu0 %604 }
  0xd3   : > { %v3143_v9 = vpop.permute.xlu1 %618  ;;  %v613_v55 = vmul.f32 0.0, %v3135_v5 }
  0xd6   : > { %v3137_v6 = vpop.permute.xlu0 %1395 }
  0xd7   : > { %4091 = vst [vmem:[#allocation16_spill] sm:$0xff] %v3137_v6  ;;  %v3147_v12 = vpop.permute.xlu1 %1409 }
  0xd8   : > { %4094 = vst [vmem:[#allocation19_spill] sm:$0xff] %v3147_v12 }
  0xda   : > { %v3141_v8 = vpop.permute.xlu0 %616 }
  0xde   : > { %v3145_v10 = vpop.permute.xlu0 %1407 }
  0xdf   : > { %4093 = vst [vmem:[#allocation18_spill] sm:$0xff] %v3145_v10 }
  0xe2   : > { %v418_v11 = vpop.permute.xlu0 %417 }
  0xe6   : > { %v3149_v13 = vpop.permute.xlu0 %652 }
  0xe8   : > { %v446_v14 = vpop.permute.xlu1 %445 }
  0xea   : > { %v3151_v15 = vpop.permute.xlu0 %1443 }
  0xec   : > { %v3153_v16 = vpop.permute.xlu1 %654 }
  0xee   : > { %v3155_v17 = vpop.permute.xlu0 %700 }
  0xef   : > { %4095 = vst [vmem:[#allocation20_spill] sm:$0xff] %v3155_v17 }
  0xf0   : > { %v3157_v18 = vpop.permute.xlu1 %1445 }
  0xf2   : > { %v3159_v19 = vpop.permute.xlu0 %1582 }
  0xf4   : > { %v3161_v20 = vpop.permute.xlu1 %702 }
  0xf5   : > { %v3164_v21 = vmul.f32 0.0, %v3161_v20  ;;  %v3166_v22 = vpop.f32.mrb[0].mxu1 }
  0xf6   : > { %4097 = vst [vmem:[#allocation22_spill] sm:$0xff] %v3166_v22  ;;  %v3168_v23 = vpop.permute.xlu0 %1545  ;;  %v3170_v24 = vpop.f32.mrb[1].mxu1 }
  0xf7   : > { %4096 = vst [vmem:[#allocation21_spill] sm:$0xff] %v3164_v21  ;;  %4098 = vst [vmem:[#allocation23_spill] sm:$0xff] %v3170_v24  ;;  %v3174_v25 = vpack.c.bf16 %v3164_v21, %v3164_v21  ;;  %v395_v26 = vpop.f32.mrb[2].mxu1 }
  0xf8   : > { %v1585_v27 = vpop.permute.xlu1 %1584  ;;  %v432_v28 = vmul.f32 %v418_v11, %v395_v26  ;;  %v397_v29 = vpop.f32.mrb[3].mxu1  ;;  %v3193_v26 = vmul.f32 0.0, %v559_v3 }
  0xf9   : > { %4099 = vst [vmem:[#allocation24_spill] sm:$0xff] %v3174_v25  ;;  %1534 = vrot.lane.b32.xlu1 %v3174_v25, %s2765_s20  ;;  %v433_v24 = vmul.f32 %v418_v11, %v397_v29  ;;  %v1593_v25 = vmul.f32 0.0, %v1585_v27 }
  0xfa   : > { %v3178_v30 = vpop.permute.xlu0 %1594  ;;  %v460_v31 = vadd.f32 %v446_v14, %v432_v28  ;;  %4102 = vst [vmem:[#allocation27_spill] sm:$0xff] %v3193_v26  ;;  %v3198_v28 = vsel %vm4082_vm4, %v3135_v5, %v3133_v4 }
  0xfb   : > { %4103 = vst [vmem:[#allocation28_spill] sm:$0xff] %v3198_v28 }
  0xfc   : > { %v3180_v32 = vpop.permute.xlu1 %1547  ;;  %v3186_v41 = vmax.f32 %v460_v31, 0.0 }
  0xfd   : > { %v1556_v44 = vmul.f32 0.0, %v3180_v32  ;;  %v401_v22 = vpop.f32.mrb[4].mxu1 }
  0xfe   : > { %v738_v21 = vpop.permute.xlu0 %737  ;;  %v434_v0 = vmul.f32 %v3047_v37, %v401_v22  ;;  %v403_v31 = vpop.f32.mrb[5].mxu1  ;;  %v568_v12 = vmul.f32 %v3191_v47, %v3186_v41  ;;  %v510_v62 = vmul.f32 %v3184_v33, %v3186_v41  ;;  %v614_v11 = vmul.f32 %v3198_v28, %v3186_v41 }
  0xff   : > { %v2597_v10 = vpack.c.bf16 %v1556_v44, %v1556_v44  ;;  %v435_v6 = vmul.f32 %v3047_v37, %v403_v31  ;;  %v3204_v7 = vpop.f32.mrb[6].mxu1  ;;  %v3213_v22 = vsel %vm4068_vm2, %v3129_v1, %v3127_v63  ;;  %v461_v33 = vadd.f32 %v446_v14, %v433_v24 }
 0x100   : > { %v1597_v3 = vpop.permute.xlu1 %1596  ;;  %4104 = vst [vmem:[#allocation29_spill] sm:$0xff] %v3204_v7  ;;  %v462_v29 = vadd.f32 %v3053_v39, %v434_v0  ;;  %v2554_v37 = vpack.c.bf16 %v568_v12, %v3193_v26  ;;  %v3218_v31 = vpop.f32.mrb[7].mxu1  ;;  %v3221_v7 = vmul.f32 %v3129_v1, %v509_v34  ;;  %v530_v58 = vmul.f32 %v3213_v22, %v510_v62 }
 0x101   : > { %v1604_v44 = vmul.f32 %v1597_v3, %v1593_v25  ;;  %1570 = vrot.lane.b32.xlu1 %v2597_v10, %s2766_s12  ;;  %4105 = vst [vmem:[#allocation30_spill] sm:$0xff] %v3218_v31  ;;  %v463_v28 = vadd.f32 %v3053_v39, %v435_v6  ;;  %v3229_v10 = vsel %vm4082_vm4, %v3141_v8, %v3143_v9  ;;  %vm1253_vm2 = vcmask 244736  }
 0x102   : > { %v759_v59 = vpop.permute.xlu0 %758  ;;  %v3231_v12 = vmax.f32 %v462_v29, 0.0  ;;  %581 = vrot.lane.b32.xlu0 %v2554_v37, %s2771_s23  ;;  %v1123_v39 = vsel %vm4067_vm5, %v3093_v52, %v3082_v49  ;;  %v1587_v62 = vsel %vm1436_vm6, %v3159_v19, %v1585_v27  ;;  %v625_v14 = vmul.f32 %v3229_v10, %v614_v11 }
 0x103   : > { %v2599_v1 = vpack.c.bf16 %v1604_v44, %v1604_v44  ;;  %v3239_v6 = vmax.f32 %v463_v28, 0.0  ;;  %v2552_v0 = vpack.c.bf16 %v530_v58, %v3221_v7  ;;  %v1127_v29 = vmul.f32 0.0, %v3093_v52 }
 0x104   : > { %v740_v5 = vpop.permute.xlu1 %739  ;;  %v1591_v24 = vmul.f32 %v3159_v19, %v3231_v12  ;;  %v3248_v44 = vmax.f32 %v461_v33, 0.0  ;;  %v1630_v27 = vmul.f32 %v738_v21, %v3231_v12  ;;  %v3255_v11 = vmul.f32 %v3141_v8, %v613_v55 }
 0x105   : > { %v742_v25 = vsel %vm645_vm7, %v738_v21, %v740_v5  ;;  %v748_v34 = vmul.f32 0.0, %v740_v5  ;;  %1618 = vrot.lane.b32.xlu1 %v2599_v1, %s4064_s13  ;;  %v1592_v28 = vmul.f32 %v1587_v62, %v3239_v6  ;;  %v746_v19 = vmul.f32 %v738_v21, %v3186_v41  ;;  %s4122_s13 = smov 1  }
 0x106   : > { %v3252_v37 = vpop.permute.xlu0 %794  ;;  %v1598_v1 = vsel %vm1436_vm6, %v3178_v30, %v1597_v3  ;;  %v3261_v58 = vmul.f32 %v3178_v30, %v1591_v24  ;;  %543 = vrot.lane.b32.xlu0 %v2552_v0, %s2772_s18  ;;  %v747_v33 = vmul.f32 %v742_v25, %v3248_v44  ;;  %v1631_v62 = vmul.f32 %v742_v25, %v3239_v6 }
 0x107   : > { %4106 = vst [vmem:[#allocation31_spill] sm:$0xff] %v3252_v37  ;;  %v3264_v52 = vmul.f32 %v1598_v1, %v1592_v28  ;;  %v1128_v55 = vmul.f32 %v1123_v39, %v3231_v12  ;;  %v3269_v8 = vmul.f32 %v759_v59, %v746_v19  ;;  %v2556_v3 = vpack.c.bf16 %v625_v14, %v3255_v11 }
 0x108   : > { %4107 = vst [vmem:[#allocation32_spill] sm:$0xff] %v3261_v58  ;;  %v761_v5 = vpop.permute.xlu1 %760  ;;  %v3275_v24 = vmul.f32 %v1630_v27, %v759_v59  ;;  %v3287_v14 = vsel %vm682_vm8, %v3155_v17, %v3161_v20  ;;  %v1339_v20 = vmul.f32 %v3191_v47, %v3231_v12  ;;  %v1452_v47 = vmul.f32 0.0, %v3151_v15 }
 0x109   : > { %4108 = vst [vmem:[#allocation33_spill] sm:$0xff] %v3269_v8  ;;  %v762_v21 = vsel %vm645_vm7, %v759_v59, %v761_v5  ;;  %v768_v31 = vmul.f32 %v761_v5, %v748_v34  ;;  %4113 = vst [vmem:[#allocation38_spill] sm:$0xff] %v3287_v14  ;;  %v2573_v19 = vpack.c.bf16 %v1128_v55, %v1127_v29  ;;  %vm4080_vm5 = vcmask 801792  }
 0x10a   : > { %4109 = vst [vmem:[#allocation34_spill] sm:$0xff] %v3275_v24  ;;  %v3277_v0 = vmul.f32 %v762_v21, %v747_v33  ;;  %v3279_v28 = vmul.f32 %v1631_v62, %v762_v21  ;;  %v832_v25 = vpop.permute.xlu0 %831  ;;  %638 = vrot.lane.b32.xlu0 %v2556_v3, %s2770_s22  ;;  %v1550_v29 = vsel %vm4069_vm11, %v3168_v23, %v3180_v32  ;;  %vm1196_vm11 = vcmask 252928  }
 0x10b   : > { %v3282_v39 = vpack.c.bf16 %v768_v31, %v768_v31  ;;  %v3305_v31 = vmul.f32 %v3155_v17, %v3231_v12  ;;  %v569_v55 = vmul.f32 %v3131_v2, %v3248_v44  ;;  %v3318_v21 = vmul.f32 %v3287_v14, %v3239_v6 }
 0x10c   : > { %4110 = vst [vmem:[#allocation35_spill] sm:$0xff] %v3277_v0  ;;  %4111 = vst [vmem:[#allocation36_spill] sm:$0xff] %v3279_v28  ;;  %v797_v27 = vpop.permute.xlu1 %796  ;;  %v3322_v3 = vmul.f32 %v3252_v37, %v3231_v12  ;;  %v3333_v59 = vmul.f32 %v3168_v23, %v3231_v12  ;;  %v1448_v34 = vsel %vm1447_vm10, %v3151_v15, %v3157_v18  ;;  %vm4083_vm4 = vcmask 588800  }
 0x10d   : > { %4112 = vst [vmem:[#allocation37_spill] sm:$0xff] %v3282_v39  ;;  %v3295_v1 = vsel %vm588_vm9, %v3252_v37, %v797_v27  ;;  %v3297_v33 = vmul.f32 0.0, %v797_v27  ;;  %1649 = vrot.lane.b32.xlu1 %v3282_v39, %s4056_s26  ;;  %v511_v27 = vmul.f32 %v3122_v61, %v3248_v44  ;;  %v2583_v23 = vpack.c.bf16 %v1339_v20, %v3193_v26  ;;  %s4119_s26 = smov 2  }
 0x10e   : > { %4114 = vst [vmem:[#allocation39_spill] sm:$0xff] %v3295_v1  ;;  %v3312_v62 = vmul.f32 %v3295_v1, %v3239_v6  ;;  %v1718_v5 = vpop.permute.xlu0 %1717  ;;  %1141 = vrot.lane.b32.xlu0 %v2573_v19, %s2777_s19  ;;  %v2594_v19 = vpack.c.bf16 %v3318_v21, %v3305_v31  ;;  %v1453_v8 = vmul.f32 %v1448_v34, %v3231_v12 }
 0x10f   : > { %4115 = vst [vmem:[#allocation40_spill] sm:$0xff] %v3297_v33  ;;  %v3327_v32 = vpack.c.bf16 %v3297_v33, %v3297_v33  ;;  %v3343_v33 = vmul.f32 %v1550_v29, %v3239_v6  ;;  %v2555_v29 = vpack.c.bf16 %v569_v55, %v569_v55  ;;  %v531_v15 = vmul.f32 %v3127_v63, %v511_v27 }
 0x110   : > { %v3338_v30 = vpop.permute.xlu1 %833  ;;  %v615_v21 = vmul.f32 %v3133_v4, %v3248_v44  ;;  %v3363_v34 = vsel %vm656_vm12, %v3149_v13, %v3153_v16  ;;  %v2589_v0 = vpack.c.bf16 %v1453_v8, %v1452_v47  ;;  %v840_v24 = vmul.f32 %v832_v25, %v3186_v41 }
 0x111   : > { %4116 = vst [vmem:[#allocation41_spill] sm:$0xff] %v3327_v32  ;;  %1676 = vrot.lane.b32.xlu1 %v3327_v32, %s2762_s25  ;;  %4118 = vst [vmem:[#allocation43_spill] sm:$0xff] %v3363_v34  ;;  %v836_v20 = vsel %vm551_vm13, %v832_v25, %v3338_v30  ;;  %v1481_v55 = vmul.f32 %v3363_v34, %v3231_v12  ;;  %v2553_v31 = vpack.c.bf16 %v531_v15, %v531_v15 }
 0x112   : > { %v844_v39 = vpop.permute.xlu0 %843  ;;  %1352 = vrot.lane.b32.xlu0 %v2583_v23, %s2771_s23  ;;  %v3371_v23 = vmul.f32 0.0, %v3149_v13  ;;  %v626_v26 = vmul.f32 %v3143_v9, %v615_v21  ;;  %v1687_v28 = vmul.f32 %v832_v25, %v3231_v12  ;;  %v1688_v47 = vmul.f32 %v836_v20, %v3239_v6 }
 0x113   : > { %v3387_v15 = vmul.f32 %v844_v39, %v840_v24  ;;  %v3439_v24 = vmul.f32 %v3295_v1, %v3248_v44 }
 0x114   : > { %v3358_v32 = vpop.permute.xlu1 %1719  ;;  %v3389_v21 = vmul.f32 %v1687_v28, %v844_v39 }
 0x115   : > { %4117 = vst [vmem:[#allocation42_spill] sm:$0xff] %v3358_v32  ;;  %583 = vrot.lane.b32.xlu1 %v2555_v29, %s2771_s23  ;;  %v841_v29 = vmul.f32 %v836_v20, %v3248_v44  ;;  %v1722_v34 = vsel %vm1301_vm14, %v1718_v5, %v3358_v32  ;;  %4121 = vst [vmem:[#allocation45_spill] sm:$0xff] %v3387_v15  ;;  %v2557_v32 = vpack.c.bf16 %v626_v26, %v626_v26 }
 0x116   : > { %v1730_v27 = vpop.permute.xlu0 %1729  ;;  %1466 = vrot.lane.b32.xlu0 %v2589_v0, %s4119_s26  ;;  %v2591_v0 = vpack.c.bf16 %v1481_v55, %v3371_v23  ;;  %v1727_v55 = vmul.f32 %v1722_v34, %v3239_v6  ;;  %v1018_v34 = vsel %vm4076_vm15, %v3036_v35, %v3042_v36  ;;  %v3455_v15 = vmul.f32 %v3252_v37, %v3186_v41 }
 0x118   : > { %v3379_v8 = vpop.permute.xlu1 %845 }
 0x119   : > { %4120 = vst [vmem:[#allocation44_spill] sm:$0xff] %v3379_v8  ;;  %v847_v13 = vsel %vm551_vm13, %v844_v39, %v3379_v8  ;;  %545 = vrot.lane.b32.xlu1 %v2553_v31, %s2772_s18  ;;  %v1129_v8 = vmul.f32 %v3082_v49, %v3239_v6  ;;  %v1726_v31 = vmul.f32 %v1718_v5, %v3231_v12 }
 0x11a   : > { %v3391_v25 = vmul.f32 %v847_v13, %v841_v29  ;;  %v3393_v58 = vmul.f32 %v1688_v47, %v847_v13  ;;  %v1766_v20 = vpop.permute.xlu0 %1765  ;;  %1494 = vrot.lane.b32.xlu0 %v2591_v0, %s4122_s13  ;;  %v1340_v13 = vmul.f32 %v3131_v2, %v3239_v6  ;;  %v1023_v0 = vmul.f32 %v1018_v34, %v3231_v12 }
 0x11b   : > { %v3409_v26 = vmul.f32 %v1730_v27, %v1726_v31  ;;  %v2574_v47 = vpack.c.bf16 %v1129_v8, %v1129_v8  ;;  %v1079_v31 = vmul.f32 0.0, %v3063_v42  ;;  %v1038_v34 = vsel %vm4076_vm15, %v3072_v45, %v3055_v40 }
 0x11c   : > { %v3404_v39 = vpop.permute.xlu1 %1731  ;;  %v1043_v2 = vmul.f32 %v1038_v34, %v1023_v0  ;;  %vm4081_vm15 = vcmask 900096  }
 0x11d   : > { %v1733_v29 = vsel %vm1301_vm14, %v1730_v27, %v3404_v39  ;;  %640 = vrot.lane.b32.xlu1 %v2557_v32, %s2770_s22  ;;  %v1090_v1 = vmul.f32 %v3080_v48, %v1079_v31  ;;  %v1024_v31 = vmul.f32 %v3042_v36, %v3239_v6 }
 0x11e   : > { %v3411_v49 = vmul.f32 %v1733_v29, %v1727_v55  ;;  %v3413_v5 = vpop.permute.xlu0 %1822  ;;  %1532 = vrot.lane.b32.xlu0 %v2594_v19, %s2765_s20  ;;  %v1022_v55 = vmul.f32 0.0, %v3036_v35  ;;  %v1075_v19 = vsel %vm4078_vm0, %v3063_v42, %v3049_v38  ;;  %v1454_v29 = vmul.f32 %v3157_v18, %v3239_v6 }
 0x11f   : > { %v4123_v35 = vpack.c.bf16 %v3343_v33, %v3333_v59  ;;  %v1080_v42 = vmul.f32 %v1075_v19, %v3231_v12  ;;  %v1086_v18 = vsel %vm4078_vm0, %v3080_v48, %v3065_v43  ;;  %v1160_v33 = vsel %vm4079_vm1, %v3086_v50, %v3074_v46 }
 0x120   : > { %v3423_v27 = vpop.permute.xlu1 %1767  ;;  %v1042_v32 = vmul.f32 %v3072_v45, %v1022_v55  ;;  %v3462_v45 = vmul.f32 %v3155_v17, %v3186_v41  ;;  %v2590_v0 = vpack.c.bf16 %v1454_v29, %v1454_v29  ;;  %v1482_v48 = vmul.f32 %v3153_v16, %v3239_v6 }
 0x121   : > { %1143 = vrot.lane.b32.xlu1 %v2574_v47, %s2777_s19  ;;  %v2584_v47 = vpack.c.bf16 %v1340_v13, %v1340_v13  ;;  %v1770_v59 = vsel %vm1253_vm2, %v1766_v20, %v3423_v27  ;;  %v4124_v55 = vpack.c.bf16 %v3312_v62, %v3322_v3  ;;  %v1091_v19 = vmul.f32 %v1086_v18, %v1080_v42  ;;  %s4163_s19 = smov 96  }
 0x122   : > { %v1787_v8 = vpop.permute.xlu0 %1786  ;;  %1568 = vrot.lane.b32.xlu0 %v4123_v35, %s2766_s12  ;;  %v1165_v34 = vmul.f32 %v1160_v33, %v3231_v12  ;;  %v3478_v35 = vmul.f32 %v3287_v14, %v3248_v44  ;;  %v1775_v37 = vmul.f32 %v1770_v59, %v3239_v6  ;;  %v2569_v17 = vpack.c.bf16 %v1043_v2, %v1042_v32  ;;  %s4132_s12 = smov 18  }
 0x123   : > { %v3488_v62 = vpack.c.bf16 %v3239_v6, %v3231_v12  ;;  %v3500_v18 = vpack.c.bf16 %v3248_v44, %v3186_v41  ;;  %v1164_v2 = vmul.f32 0.0, %v3086_v50  ;;  %v1171_v32 = vsel %vm4079_vm1, %v3100_v54, %v3088_v51 }
 0x124   : > { %v3450_v28 = vpop.permute.xlu1 %1824  ;;  %v2592_v29 = vpack.c.bf16 %v1482_v48, %v1482_v48  ;;  %v1081_v50 = vmul.f32 %v3049_v38, %v3239_v6  ;;  %v1831_v14 = vmul.f32 %v3413_v5, %v3231_v12  ;;  %v1176_v38 = vmul.f32 %v1171_v32, %v1165_v34 }
 0x125   : > { %1354 = vrot.lane.b32.xlu1 %v2584_v47, %s2771_s23  ;;  %v1774_v47 = vmul.f32 %v1766_v20, %v3231_v12  ;;  %v1827_v3 = vsel %vm1196_vm11, %v3413_v5, %v3450_v28  ;;  %4125 = vst [vmem:[#allocation46_spill] sm:$0xff] %v3500_v18  ;;  %v1044_v20 = vmul.f32 %v3055_v40, %v1024_v31  ;;  %v1221_v5 = vmul.f32 0.0, %v3106_v56 }
 0x126   : > { %v1835_v13 = vpop.permute.xlu0 %1834  ;;  %1674 = vrot.lane.b32.xlu0 %v4124_v55, %s2762_s25  ;;  %v2571_v40 = vpack.c.bf16 %v1091_v19, %v1090_v1  ;;  %v1175_v48 = vmul.f32 %v3100_v54, %v1164_v2  ;;  %v1166_v1 = vmul.f32 %v3074_v46, %v3239_v6  ;;  %v4126_v54 = vld [vmem:[#allocation11_spill] sm:$0xff]  ;;  %v4127_v19 = vld [vmem:[#allocation12_spill] sm:$0xff]  ;;  %vm1111_vm0 = vcmask 269312  }
 0x127   : > { %v3506_v59 = vmul.f32 %v1787_v8, %v1774_v47  ;;  %v3530_v31 = vmul.f32 %v1835_v13, %v1831_v14  ;;  %v2570_v18 = vpack.c.bf16 %v1044_v20, %v1044_v20  ;;  %vm1148_vm1 = vcmask 261120  }
 0x128   : > { %v3484_v36 = vpop.permute.xlu1 %1788  ;;  %v2575_v2 = vpack.c.bf16 %v1176_v38, %v1175_v48  ;;  %v1269_v46 = vmul.f32 0.0, %v4127_v19 }
 0x129   : > { %v1790_v42 = vsel %vm1253_vm2, %v1787_v8, %v3484_v36  ;;  %1468 = vrot.lane.b32.xlu1 %v2590_v0, %s4119_s26  ;;  %v1217_v0 = vsel %vm4080_vm5, %v3106_v56, %v3095_v53  ;;  %v1832_v8 = vmul.f32 %v1827_v3, %v3239_v6  ;;  %v1265_v56 = vsel %vm4081_vm15, %v4127_v19, %v4126_v54  ;;  %s4150_s26 = smov 110  }
 0x12a   : > { %v3508_v33 = vmul.f32 %v1790_v42, %v1775_v37  ;;  %v1908_v55 = vpop.permute.xlu0 %1907  ;;  %1056 = vrot.lane.b32.xlu0 %v2569_v17, %s2778_s21  ;;  %v1222_v42 = vmul.f32 %v1217_v0, %v3231_v12  ;;  %v1228_v0 = vsel %vm4080_vm5, %v3120_v60, %v3108_v57  ;;  %v1270_v20 = vmul.f32 %v1265_v56, %v3231_v12 }
 0x12b   : > { %vm1399_vm5 = vcmask 932864  }
 0x12c   : > { %v3522_v47 = vpop.permute.xlu1 %1836  ;;  %v1233_v34 = vmul.f32 %v1228_v0, %v1222_v42  ;;  %v1223_v42 = vmul.f32 %v3095_v53, %v3239_v6 }
 0x12d   : > { %v1838_v17 = vsel %vm1196_vm11, %v1835_v13, %v3522_v47  ;;  %1496 = vrot.lane.b32.xlu1 %v2592_v29, %s4122_s13  ;;  %v1092_v29 = vmul.f32 %v3065_v43, %v1081_v50  ;;  %v1232_v43 = vmul.f32 %v3120_v60, %v1221_v5 }
 0x12e   : > { %v3532_v3 = vmul.f32 %v1838_v17, %v1832_v8  ;;  %v1871_v37 = vpop.permute.xlu0 %1870  ;;  %1104 = vrot.lane.b32.xlu0 %v2571_v40, %s2776_s17  ;;  %v1177_v8 = vmul.f32 %v3088_v51, %v1166_v1  ;;  %v4128_v17 = vld [vmem:[#allocation13_spill] sm:$0xff] }
 0x12f   : > { %v2572_v50 = vpack.c.bf16 %v1092_v29, %v1092_v29  ;;  %v2577_v60 = vpack.c.bf16 %v1233_v34, %v1232_v43  ;;  %v4130_v51 = vld [vmem:[#allocation25_spill] sm:$0xff]  ;;  %v3569_v53 = vmul.f32 %v1871_v37, %v3231_v12  ;;  %v1234_v34 = vmul.f32 %v3108_v57, %v1223_v42 }
 0x130   : > { %v2610_v14 = vpack.c.bf16 %v3532_v3, %v3530_v31  ;;  %v3546_v13 = vpop.permute.xlu1 %1909  ;;  %v1309_v29 = vmul.f32 %v4130_v51, %v3231_v12  ;;  %v2576_v56 = vpack.c.bf16 %v1177_v8, %v1177_v8  ;;  %v4133_v51 = vld [vmem:[#allocation17_spill] sm:$0xff]  ;;  %v4162_v3 = vpack.c.bf16 %v3439_v24, %v3455_v15  ;;  %v3726_v24 = vld [vmem:[%s4010_s3] sm:$0xff] }
 0x131   : > { %1058 = vrot.lane.b32.xlu1 %v2570_v18, %s2778_s21  ;;  %v4129_v18 = vld [vmem:[#allocation14_spill] sm:$0xff]  ;;  %v1912_v48 = vsel %vm1111_vm0, %v1908_v55, %v3546_v13  ;;  %s4138_s21 = smov 114  }
 0x132   : > { %v1920_v32 = vpop.permute.xlu0 %1919  ;;  %1189 = vrot.lane.b32.xlu0 %v2575_v2, %s2775_s10  ;;  %v1276_v40 = vsel %vm4081_vm15, %v4129_v18, %v4128_v17  ;;  %v1280_v19 = vmul.f32 %v4129_v18, %v1269_v46  ;;  %v1271_v2 = vmul.f32 %v4126_v54, %v3239_v6  ;;  %v1917_v43 = vmul.f32 %v1912_v48, %v3239_v6  ;;  %v4131_v54 = vld [vmem:[#allocation28_spill] sm:$0xff] }
 0x133   : > { %v1281_v0 = vmul.f32 %v1276_v40, %v1270_v20  ;;  %v1916_v20 = vmul.f32 %v1908_v55, %v3231_v12  ;;  %v1312_v8 = vmul.f32 %v1309_v29, %v3213_v22  ;;  %v1366_v42 = vmul.f32 %v4131_v54, %v3231_v12  ;;  %v4136_v54 = vld [vmem:[#allocation18_spill] sm:$0xff] }
 0x134   : > { %v3559_v38 = vpop.permute.xlu1 %1872  ;;  %vm1063_vm15 = vcmask 277504   ;;  %v1282_v48 = vmul.f32 %v4128_v17, %v1271_v2 }
 0x135   : > { %v1875_v5 = vsel %vm1148_vm1, %v1871_v37, %v3559_v38  ;;  %1106 = vrot.lane.b32.xlu1 %v2572_v50, %s2776_s17  ;;  %v2579_v57 = vpack.c.bf16 %v1281_v0, %v1280_v19  ;;  %v3591_v55 = vmul.f32 %v1920_v32, %v1916_v20  ;;  %v4134_v0 = vld [vmem:[#allocation16_spill] sm:$0xff]  ;;  %v1369_v17 = vmul.f32 %v1366_v42, %v3229_v10  ;;  %s4156_s17 = smov 97  }
 0x136   : > { %v3572_v1 = vmul.f32 %v1875_v5, %v3239_v6  ;;  %1246 = vrot.lane.b32.xlu0 %v2577_v60, %s2774_s24  ;;  %v1956_v40 = vpop.permute.xlu0 %1955  ;;  %v2578_v60 = vpack.c.bf16 %v1234_v34, %v1234_v34  ;;  %v1310_v5 = vmul.f32 %v3122_v61, %v3239_v6  ;;  %v1400_v22 = vsel %vm1399_vm5, %v4134_v0, %v4133_v51 }
 0x137   : > { %v1405_v61 = vmul.f32 %v1400_v22, %v3231_v12  ;;  %v1404_v34 = vmul.f32 0.0, %v4134_v0  ;;  %v2580_v20 = vpack.c.bf16 %v1282_v48, %v1282_v48  ;;  %v1406_v22 = vmul.f32 %v4133_v51, %v3239_v6 }
 0x138   : > { %v2612_v37 = vpack.c.bf16 %v3572_v1, %v3569_v53  ;;  %v3583_v50 = vpop.permute.xlu1 %1921  ;;  %v663_v51 = vmul.f32 %v3153_v16, %v3248_v44  ;;  %v2517_v53 = vcombine.high %v3726_v24, %v3726_v24 }
 0x139   : > { %v1923_v46 = vsel %vm1111_vm0, %v1920_v32, %v3583_v50  ;;  %1191 = vrot.lane.b32.xlu1 %v2576_v56, %s2775_s10  ;;  %v2581_v56 = vpack.c.bf16 %v1312_v8, %v3221_v7  ;;  %v1964_v7 = vmul.f32 %v1956_v40, %v3231_v12  ;;  %v1415_v0 = vmul.f32 %v4136_v54, %v1404_v34  ;;  %s4137_s10 = smov 14  }
 0x13a   : > { %v3593_v18 = vmul.f32 %v1923_v46, %v1917_v43  ;;  %1294 = vrot.lane.b32.xlu0 %v2579_v57, %s4132_s12  ;;  %v1968_v2 = vpop.permute.xlu0 %1967  ;;  %v1313_v43 = vmul.f32 %v1310_v5, %v3127_v63  ;;  %v1367_v46 = vmul.f32 %v3133_v4, %v3239_v6  ;;  %v4135_v57 = vld [vmem:[#allocation19_spill] sm:$0xff]  ;;  %v2585_v63 = vpack.c.bf16 %v1369_v17, %v3255_v11 }
 0x13b   : > { %v3628_v5 = vmul.f32 %v1968_v2, %v1964_v7  ;;  %v1417_v17 = vmul.f32 %v4135_v57, %v1406_v22  ;;  %2545 = vmatprep.mubr.msk.bf16.mxu0 %vm4083_vm4, %v2517_v53  ;;  %vm549_vm4 = vcmask 1043456  }
 0x13c   : > { %v2614_v29 = vpack.c.bf16 %v3593_v18, %v3591_v55  ;;  %v3604_v32 = vpop.permute.xlu1 %1957  ;;  %v2582_v12 = vpack.c.bf16 %v1313_v43, %v1313_v43  ;;  %v4142_v43 = vld [vmem:[#allocation42_spill] sm:$0xff] }
 0x13d   : > { %v1960_v19 = vsel %vm1063_vm15, %v1956_v40, %v3604_v32  ;;  %1248 = vrot.lane.b32.xlu1 %v2578_v60, %s2774_s24  ;;  %v1411_v60 = vsel %vm1399_vm5, %v4136_v54, %v4135_v57  ;;  %v1370_v40 = vmul.f32 %v1367_v46, %v3143_v9  ;;  %v4139_v9 = vld [vmem:[#allocation32_spill] sm:$0xff]  ;;  %v1728_v46 = vmul.f32 0.0, %v4142_v43  ;;  %s4148_s24 = smov 111   ;;  %v316_v18 = vld [vmem:[%s4012_s5 + $0x18] sm:$0xff] }
 0x13e   : > { %1325 = vrot.lane.b32.xlu0 %v2581_v56, %s2772_s18  ;;  %v1965_v10 = vmul.f32 %v1960_v19, %v3239_v6  ;;  %v1416_v48 = vmul.f32 %v1411_v60, %v1405_v61  ;;  %v842_v61 = vmul.f32 0.0, %v3338_v30  ;;  %v4140_v34 = vpack.c.bf16 %v3264_v52, %v4139_v9  ;;  %v4143_v57 = vld [vmem:[#allocation44_spill] sm:$0xff]  ;;  %v4146_v60 = vld [vmem:[#allocation34_spill] sm:$0xff] }
 0x13f   : > { %v2586_v56 = vpack.c.bf16 %v1370_v40, %v1370_v40  ;;  %v2588_v6 = vpack.c.bf16 %v1417_v17, %v1417_v17  ;;  %v4145_v30 = vld [vmem:[#allocation36_spill] sm:$0xff]  ;;  %v2559_v52 = vpack.c.bf16 %v663_v51, %v663_v51 }
 0x140   : > { %v3622_v8 = vpop.permute.xlu1 %1969  ;;  %v2587_v11 = vpack.c.bf16 %v1416_v48, %v1415_v0  ;;  %v853_v54 = vmul.f32 %v4143_v57, %v842_v61  ;;  %v4147_v7 = vpack.c.bf16 %v4145_v30, %v4146_v60  ;;  %v4149_v48 = vpack.c.bf16 %v3393_v58, %v3389_v21  ;;  %v4152_v40 = vld [vmem:[#allocation24_spill] sm:$0xff] }
 0x141   : > { %v1971_v42 = vsel %vm1063_vm15, %v1968_v2, %v3622_v8  ;;  %1296 = vrot.lane.b32.xlu1 %v2580_v20, %s4132_s12  ;;  %v4141_v2 = vld [vmem:[#allocation43_spill] sm:$0xff]  ;;  %v1833_v0 = vmul.f32 0.0, %v3450_v28  ;;  %v4153_v58 = vpack.c.bf16 %v3478_v35, %v3462_v45  ;;  %v4155_v28 = vpack.c.bf16 %v3508_v33, %v3506_v59  ;;  %v4161_v59 = vld [vmem:[#allocation41_spill] sm:$0xff]  ;;  %s4164_s12 = smov 95  }
 0x142   : > { %v3630_v4 = vmul.f32 %v1971_v42, %v1965_v10  ;;  %1382 = vrot.lane.b32.xlu0 %v2585_v63, %s2770_s22  ;;  %v662_v20 = vmul.f32 %v4141_v2, %v3186_v41  ;;  %v2568_v44 = vpack.c.bf16 %v853_v54, %v853_v54  ;;  %v1739_v42 = vmul.f32 %v3404_v39, %v1728_v46  ;;  %v4158_v35 = vld [vmem:[#allocation35_spill] sm:$0xff] }
 0x143   : > { %v1776_v63 = vmul.f32 0.0, %v3423_v27  ;;  %v4151_v39 = vpack.c.bf16 %v3411_v49, %v3409_v26  ;;  %v1844_v22 = vmul.f32 %v3522_v47, %v1833_v0  ;;  %v4157_v26 = vld [vmem:[#allocation37_spill] sm:$0xff]  ;;  %v1918_v49 = vmul.f32 0.0, %v3546_v13 }
 0x144   : > { %v2616_v19 = vpack.c.bf16 %v3630_v4, %v3628_v5  ;;  %v2558_v10 = vpack.c.bf16 %v662_v20, %v3371_v23  ;;  %v2607_v41 = vpack.c.bf16 %v1739_v42, %v1739_v42  ;;  %v1881_v45 = vmul.f32 0.0, %v3559_v38 }
 0x145   : > { %1327 = vrot.lane.b32.xlu1 %v2582_v12, %s2772_s18  ;;  %s4144_s18 = smov 113   ;;  %v1796_v12 = vmul.f32 %v3484_v36, %v1776_v63  ;;  %v2611_v21 = vpack.c.bf16 %v1844_v22, %v1844_v22  ;;  %v4159_v36 = vld [vmem:[#allocation33_spill] sm:$0xff]  ;;  %v1966_v13 = vmul.f32 0.0, %v3604_v32 }
 0x146   : > { %1429 = vrot.lane.b32.xlu0 %v2587_v11, %s4137_s10  ;;  %v4160_v47 = vpack.c.bf16 %v4158_v35, %v4159_v36  ;;  %v2613_v33 = vpack.c.bf16 %v1881_v45, %v1881_v45  ;;  %v1929_v11 = vmul.f32 %v3583_v50, %v1918_v49  ;;  %v4165_v32 = vld [vmem:[#allocation45_spill] sm:$0xff] }
 0x147   : > { %v2609_v27 = vpack.c.bf16 %v1796_v12, %v1796_v12  ;;  %v1977_v50 = vmul.f32 %v3622_v8, %v1966_v13  ;;  %v4166_v8 = vpack.c.bf16 %v3391_v25, %v4165_v32  ;;  %v309_v25 = vld [vmem:[%s4011_s4 + $0x18] sm:$0xff] }
 0x149   : > { %1384 = vrot.lane.b32.xlu1 %v2586_v56, %s2770_s22  ;;  %s4154_s22 = smov 98   ;;  %v2617_v1 = vpack.c.bf16 %v1977_v50, %v1977_v50 }
 0x14a   : > { %1616 = vrot.lane.b32.xlu0 %v4140_v34, %s4138_s21 }
 0x14d   : > { %1431 = vrot.lane.b32.xlu1 %v2588_v6, %s4137_s10 }
 0x14e   : > { %1647 = vrot.lane.b32.xlu0 %v4147_v7, %s4144_s18 }
 0x151   : > { %677 = vrot.lane.b32.xlu1 %v2559_v52, %s4122_s13 }
 0x152   : > { %675 = vrot.lane.b32.xlu0 %v2558_v10, %s4122_s13 }
 0x155   : > { %1706 = vrot.lane.b32.xlu1 %v2568_v44, %s4148_s24 }
 0x156   : > { %1704 = vrot.lane.b32.xlu0 %v4149_v48, %s4148_s24 }
 0x159   : > { %1753 = vrot.lane.b32.xlu1 %v2607_v41, %s4150_s26 }
 0x15a   : > { %1751 = vrot.lane.b32.xlu0 %v4151_v39, %s4150_s26 }
 0x15d   : > { %725 = vrot.lane.b32.xlu1 %v4152_v40, %s2765_s20 }
 0x15e   : > { %723 = vrot.lane.b32.xlu0 %v4153_v58, %s2765_s20 }
 0x161   : > { %1810 = vrot.lane.b32.xlu1 %v2609_v27, %s4154_s22 }
 0x162   : > { %1808 = vrot.lane.b32.xlu0 %v4155_v28, %s4154_s22  ;;  %s296_s22 = sand.u32 1, %s2744_s28  }
 0x163   : > { %s3965_s21 = scalar_lea.sflag [#allocation9], %s296_s22 }
 0x165   : > { %1858 = vrot.lane.b32.xlu1 %v2611_v21, %s4156_s17 }
 0x166   : > { %1856 = vrot.lane.b32.xlu0 %v2610_v14, %s4156_s17  ;;  %v2615_v14 = vpack.c.bf16 %v1929_v11, %v1929_v11  ;;  %s2423_s17 = sshll.u32 %s296_s22, 6 }
 0x169   : > { %782 = vrot.lane.b32.xlu1 %v4157_v26, %s4144_s18 }
 0x16a   : > { %780 = vrot.lane.b32.xlu0 %v4160_v47, %s4144_s18  ;;  %s4167_s18 = smov 94  }
 0x16b   : > { %v1535_v31 = vpop.permute.xlu1 %1534 }
 0x16c   : > { %v1537_v10 = vrot.slane %v1535_v31, 4 }
 0x16d   : > { %819 = vrot.lane.b32.xlu1 %v4161_v59, %s2762_s25 }
 0x16e   : > { %817 = vrot.lane.b32.xlu0 %v4162_v3, %s2762_s25 }
 0x171   : > { %1895 = vrot.lane.b32.xlu1 %v2613_v33, %s4163_s19 }
 0x172   : > { %1893 = vrot.lane.b32.xlu0 %v2612_v37, %s4163_s19 }
 0x173   : > { %v3714_v38 = vpop.permute.xlu1 %1570 }
 0x174   : > { %v582_v56 = vpop.permute.xlu0 %581 }
 0x175   : > { %1943 = vrot.lane.b32.xlu1 %v2615_v14, %s4164_s12 }
 0x176   : > { %1941 = vrot.lane.b32.xlu0 %v2614_v29, %s4164_s12 }
 0x177   : > { %v3730_v37 = vpop.permute.xlu1 %1618 }
 0x178   : > { %v544_v15 = vpop.permute.xlu0 %543 }
 0x179   : > { %867 = vrot.lane.b32.xlu1 %v2568_v44, %s4148_s24  ;;  %v547_v51 = vrot.slane %v544_v15, 4 }
 0x17a   : > { %865 = vrot.lane.b32.xlu0 %v4166_v8, %s4148_s24  ;;  %s3940_s24 = scalar_lea.vmem [#allocation8], %s2423_s17 }
 0x17b   : > { %s2357_s19 = sshll.u32 %s3940_s24, 4  ;;  %s3960_s19 = int_to_ptr.vmem [resolvable:$true] %s2357_s19 }
 0x17c   : > { %v3737_v55 = vpop.permute.xlu0 %638 }
 0x17d   : > { %1991 = vrot.lane.b32.xlu1 %v2617_v1, %s4167_s18 }
 0x17e   : > { %1989 = vrot.lane.b32.xlu0 %v2616_v19, %s4167_s18  ;;  %v585_v19 = vrot.slane %v582_v56, 4  ;;  %s2690_s18 = scalar_lea.vmem %s3960_s19, 1024 }
 0x17f   : > { %v3747_v29 = vpop.permute.xlu1 %1649  ;;  %p2691_p11 = scmp.ne.s32.totalorder %s3960_s19, %s2690_s18 }
 0x180   : > { %v3752_v17 = vpop.permute.xlu0 %1141 }
 0x181   : > { %455 = vperm.xlu1 %2685, %v316_v18   ;;  %v1145_v11 = vrot.slane %v3752_v17, 4  ;;  %p2692_p12 = pnand %p2691_p11, %p2864_p5 }
 0x182   : > { %427 = vperm.xlu0 %2684, %v309_v25  }
 0x183   : > { %v3754_v61 = vpop.permute.xlu1 %1676  ;;  %p2693_p13 = pneg %p2692_p12 }
 0x184   : > { %v3756_v9 = vpop.permute.xlu0 %1352 }
 0x186   : > { %2234 = vrot.lane.b32.xlu0 %v3371_v23, %s4122_s13 }
 0x187   : > { %v584_v34 = vpop.permute.xlu1 %583 }
 0x188   : > { %v586_v5 = vrot.slane %v584_v34, 4  ;;  %v3760_v4 = vpop.permute.xlu0 %1466 }
 0x18a   : > { %v587_v20 = vsel %vm549_vm4, %v585_v19, %v586_v5 }
 0x18b   : > { %v546_v6 = vpop.permute.xlu1 %545  ;;  %v589_v23 = vsel %vm588_vm9, %v582_v56, %v587_v20 }
 0x18c   : > { %v548_v43 = vrot.slane %v546_v6, 4  ;;  %v3763_v46 = vpop.permute.xlu0 %1494 }
 0x18e   : > { %v550_v57 = vsel %vm549_vm4, %v547_v51, %v548_v43 }
 0x18f   : > { %v3766_v54 = vpop.permute.xlu1 %640  ;;  %v552_v30 = vsel %vm551_vm13, %v544_v15, %v550_v57 }
 0x190   : > { %v2455_v60 = vcombine.low %v552_v30, %v589_v23  ;;  %v2456_v7 = vcombine.high %v552_v30, %v589_v23  ;;  %v1533_v52 = vpop.permute.xlu0 %1532 }
 0x191   : > { %v1536_v44 = vrot.slane %v1533_v52, 4 }
 0x192   : > { %942 = vmatprep.subr.bf16.mxu1 %v2456_v7 }
 0x193   : > { %943 = vmatpush1.bf16.msra.mxu1 %v2455_v60  ;;  %v1144_v42 = vpop.permute.xlu1 %1143  ;;  %v1538_v41 = vsel %vm549_vm4, %v1536_v44, %v1537_v10 }
 0x194   : > { %v3772_v63 = vsel %vm656_vm12, %v1533_v52, %v1538_v41  ;;  %v3774_v48 = vpop.permute.xlu0 %1568  ;;  %v1146_v35 = vrot.slane %v1144_v42, 4  ;;  %v1356_v52 = vrot.slane %v3756_v9, 4 }
 0x195   : > { %v2530_v0 = vcombine.low %v3488_v62, %v3772_v63  ;;  %v2531_v12 = vcombine.high %v3488_v62, %v3772_v63 }
 0x196   : > { %v1147_v14 = vsel %vm549_vm4, %v1145_v11, %v1146_v35  ;;  %v1573_v11 = vrot.slane %v3714_v38, 4  ;;  %v1679_v38 = vrot.slane %v3754_v61, 4 }
 0x197   : > { %v1355_v39 = vpop.permute.xlu1 %1354  ;;  %v1149_v34 = vsel %vm1148_vm1, %v3752_v17, %v1147_v14  ;;  %vm4179_vm1 = vcmask 769024  }
 0x198   : > { %v3780_v40 = vpop.permute.xlu0 %1674  ;;  %v1357_v57 = vrot.slane %v1355_v39, 4 }
 0x19a   : > { %v1358_v44 = vsel %vm549_vm4, %v1356_v52, %v1357_v57 }
 0x19b   : > { %v3782_v27 = vpop.permute.xlu1 %1468 }
 0x19c   : > { %v1057_v22 = vpop.permute.xlu0 %1056 }
 0x19d   : > { %v1060_v45 = vrot.slane %v1057_v22, 4 }
 0x19f   : > { %v3784_v58 = vpop.permute.xlu1 %1496 }
 0x1a0   : > { %v1105_v21 = vpop.permute.xlu0 %1104 }
 0x1a1   : > { %v1108_v47 = vrot.slane %v1105_v21, 4 }
 0x1a3   : > { %v1059_v28 = vpop.permute.xlu1 %1058 }
 0x1a4   : > { %v1061_v26 = vrot.slane %v1059_v28, 4  ;;  %v1190_v49 = vpop.permute.xlu0 %1189 }
 0x1a5   : > { %v1193_v15 = vrot.slane %v1190_v49, 4 }
 0x1a6   : > { %v1062_v33 = vsel %vm549_vm4, %v1060_v45, %v1061_v26  ;;  %v1572_v45 = vrot.slane %v3774_v48, 4 }
 0x1a7   : > { %v1107_v36 = vpop.permute.xlu1 %1106  ;;  %v1064_v56 = vsel %vm1063_vm15, %v1057_v22, %v1062_v33  ;;  %v1359_v33 = vsel %vm588_vm9, %v3756_v9, %v1358_v44  ;;  %vm4177_vm15 = vcmask 777216  }
 0x1a8   : > { %v1109_v59 = vrot.slane %v1107_v36, 4  ;;  %v1247_v31 = vpop.permute.xlu0 %1246  ;;  %v1499_v36 = vrot.slane %v3784_v58, 4  ;;  %v1471_v58 = vrot.slane %v3782_v27, 4 }
 0x1a9   : > { %v1250_v43 = vrot.slane %v1247_v31, 4 }
 0x1aa   : > { %v1110_v3 = vsel %vm549_vm4, %v1108_v47, %v1109_v59 }
 0x1ab   : > { %v1192_v13 = vpop.permute.xlu1 %1191  ;;  %v1112_v50 = vsel %vm1111_vm0, %v1105_v21, %v1110_v3 }
 0x1ac   : > { %v1194_v53 = vrot.slane %v1192_v13, 4  ;;  %v2519_v1 = vcombine.high %v1064_v56, %v1112_v50  ;;  %v2518_v32 = vcombine.low %v1064_v56, %v1112_v50  ;;  %v1295_v8 = vpop.permute.xlu0 %1294  ;;  %v1621_v13 = vrot.slane %v3730_v37, 4 }
 0x1ad   : > { %v1298_v23 = vrot.slane %v1295_v8, 4  ;;  %v1498_v56 = vrot.slane %v3763_v46, 4  ;;  %v1678_v50 = vrot.slane %v3780_v40, 4  ;;  %v643_v37 = vrot.slane %v3766_v54, 4 }
 0x1ae   : > { %v1195_v18 = vsel %vm549_vm4, %v1193_v15, %v1194_v53  ;;  %2166 = vmatprep.subr.bf16.mxu0 %v2519_v1  ;;  %v1652_v53 = vrot.slane %v3747_v29, 4  ;;  %v1574_v1 = vsel %vm549_vm4, %v1572_v45, %v1573_v11 }
 0x1af   : > { %2167 = vmatpush1.bf16.msra.mxu0 %v2518_v32  ;;  %v1249_v25 = vpop.permute.xlu1 %1248  ;;  %v1197_v5 = vsel %vm1196_vm11, %v1190_v49, %v1195_v18  ;;  %v1500_v18 = vsel %vm549_vm4, %v1498_v56, %v1499_v36  ;;  %vm4174_vm11 = vcmask 793600  }
 0x1b0   : > { %v1251_v19 = vrot.slane %v1249_v25, 4  ;;  %v2521_v6 = vcombine.high %v1149_v34, %v1197_v5  ;;  %v2520_v51 = vcombine.low %v1149_v34, %v1197_v5  ;;  %v1326_v20 = vpop.permute.xlu0 %1325 }
 0x1b1   : > { %v1329_v21 = vrot.slane %v1326_v20, 4 }
 0x1b2   : > { %2168 = vmatprep.subr.bf16.mxu0 %v2521_v6  ;;  %v1252_v60 = vsel %vm549_vm4, %v1250_v43, %v1251_v19  ;;  %v1576_v19 = vsel %vm1447_vm10, %v3774_v48, %v1574_v1  ;;  %v1680_v6 = vsel %vm549_vm4, %v1678_v50, %v1679_v38  ;;  %v1501_v48 = vsel %vm682_vm8, %v3763_v46, %v1500_v18 }
 0x1b3   : > { %2169 = vmatpush1.bf16.msra.mxu0 %v2520_v51  ;;  %v1297_v30 = vpop.permute.xlu1 %1296  ;;  %v1254_v41 = vsel %vm1253_vm2, %v1247_v31, %v1252_v60  ;;  %vm4168_vm2 = vcmask 924672   ;;  %vm4173_vm10 = vcmask 801792  }
 0x1b4   : > { %v1299_v7 = vrot.slane %v1297_v30, 4  ;;  %v1383_v10 = vpop.permute.xlu0 %1382 }
 0x1b5   : > { %v1386_v32 = vrot.slane %v1383_v10, 4 }
 0x1b6   : > { %v1300_v17 = vsel %vm549_vm4, %v1298_v23, %v1299_v7  ;;  %v642_v23 = vrot.slane %v3737_v55, 4 }
 0x1b7   : > { %v1328_v42 = vpop.permute.xlu1 %1327  ;;  %v1302_v22 = vsel %vm1301_vm14, %v1295_v8, %v1300_v17  ;;  %v1470_v8 = vrot.slane %v3760_v4, 4  ;;  %vm4176_vm14 = vcmask 785408  }
 0x1b8   : > { %v1330_v39 = vrot.slane %v1328_v42, 4  ;;  %v2523_v28 = vcombine.high %v1254_v41, %v1302_v22  ;;  %v2522_v26 = vcombine.low %v1254_v41, %v1302_v22  ;;  %v1430_v49 = vpop.permute.xlu0 %1429  ;;  %v644_v22 = vsel %vm549_vm4, %v642_v23, %v643_v37  ;;  %v4172_v37 = vld [vmem:[#allocation46_spill] sm:$0xff] }
 0x1b9   : > { %v1433_v34 = vrot.slane %v1430_v49, 4  ;;  %v1472_v61 = vsel %vm549_vm4, %v1470_v8, %v1471_v58 }
 0x1ba   : > { %v1331_v35 = vsel %vm549_vm4, %v1329_v21, %v1330_v39  ;;  %2170 = vmatprep.subr.bf16.mxu0 %v2523_v28  ;;  %v1681_v21 = vsel %vm562_vm3, %v3780_v40, %v1680_v6 }
 0x1bb   : > { %2171 = vmatpush1.bf16.msra.mxu0 %v2522_v26  ;;  %v1385_v47 = vpop.permute.xlu1 %1384  ;;  %v1332_v59 = vsel %vm551_vm13, %v1326_v20, %v1331_v35  ;;  %vm4175_vm13 = vmmov %vm4168_vm2 }
 0x1bc   : > { %v1387_v31 = vrot.slane %v1385_v47, 4  ;;  %v2525_v3 = vcombine.high %v1332_v59, %v1359_v33  ;;  %v2524_v14 = vcombine.low %v1332_v59, %v1359_v33  ;;  %v1617_v15 = vpop.permute.xlu0 %1616  ;;  %v646_v47 = vsel %vm645_vm7, %v3737_v55, %v644_v22 }
 0x1bd   : > { %v1620_v9 = vrot.slane %v1617_v15, 4 }
 0x1be   : > { %2172 = vmatprep.subr.bf16.mxu0 %v2525_v3  ;;  %v1388_v27 = vsel %vm549_vm4, %v1386_v32, %v1387_v31 }
 0x1bf   : > { %2173 = vmatpush1.bf16.msra.mxu0 %v2524_v14  ;;  %v1432_v25 = vpop.permute.xlu1 %1431  ;;  %v1622_v29 = vsel %vm549_vm4, %v1620_v9, %v1621_v13  ;;  %v1389_v7 = vsel %vm645_vm7, %v1383_v10, %v1388_v27  ;;  %vm4171_vm7 = vcmask 908288  }
 0x1c0   : > { %v1434_v5 = vrot.slane %v1432_v25, 4  ;;  %v1624_v51 = vsel %vm1399_vm5, %v1617_v15, %v1622_v29  ;;  %v1648_v54 = vpop.permute.xlu0 %1647  ;;  %vm4169_vm5 = vcmask 15360   ;;  %vm4178_vm0 = vmmov %vm4171_vm7 }
 0x1c1   : > { %v2532_v20 = vcombine.low %v1576_v19, %v1624_v51  ;;  %v2533_v43 = vcombine.high %v1576_v19, %v1624_v51  ;;  %v1651_v30 = vrot.slane %v1648_v54, 4  ;;  %v1474_v10 = vsel %vm4169_vm5, %v3760_v4, %v1472_v61 }
 0x1c2   : > { %v1435_v57 = vsel %vm549_vm4, %v1433_v34, %v1434_v5  ;;  %v2529_v46 = vcombine.high %v1474_v10, %v1501_v48  ;;  %v2528_v33 = vcombine.low %v1474_v10, %v1501_v48 }
 0x1c3   : > { %v678_v60 = vpop.permute.xlu1 %677  ;;  %v1437_v52 = vsel %vm1436_vm6, %v1430_v49, %v1435_v57  ;;  %v1653_v17 = vsel %vm549_vm4, %v1651_v30, %v1652_v53  ;;  %vm4170_vm6 = vcmask 900096  }
 0x1c4   : > { %v680_v44 = vrot.slane %v678_v60, 4  ;;  %v2527_v42 = vcombine.high %v1389_v7, %v1437_v52  ;;  %v2526_v41 = vcombine.low %v1389_v7, %v1437_v52  ;;  %v1654_v39 = vsel %vm4168_vm2, %v1648_v54, %v1653_v17  ;;  %v676_v28 = vpop.permute.xlu0 %675 }
 0x1c5   : > { %v2534_v26 = vcombine.low %v1654_v39, %v1681_v21  ;;  %v2535_v49 = vcombine.high %v1654_v39, %v1681_v21  ;;  %v679_v45 = vrot.slane %v676_v28, 4  ;;  %vm4180_vm2 = vcmask 588800  }
 0x1c6   : > { %2174 = vmatprep.subr.bf16.mxu0 %v2527_v42 }
 0x1c7   : > { %2175 = vmatpush1.bf16.msra.mxu0 %v2526_v41  ;;  %v1707_v35 = vpop.permute.xlu1 %1706  ;;  %v681_v36 = vsel %vm549_vm4, %v679_v45, %v680_v44 }
 0x1c8   : > { %2176 = vmatprep.subr.bf16.mxu0 %v2529_v46  ;;  %v683_v40 = vsel %vm682_vm8, %v676_v28, %v681_v36  ;;  %v1705_v59 = vpop.permute.xlu0 %1704  ;;  %v1709_v14 = vrot.slane %v1707_v35, 4 }
 0x1c9   : > { %v2457_v11 = vcombine.low %v646_v47, %v683_v40  ;;  %v2458_v31 = vcombine.high %v646_v47, %v683_v40  ;;  %v1708_v13 = vrot.slane %v1705_v59, 4 }
 0x1cb   : > { %2177 = vmatpush1.bf16.msra.mxu0 %v2528_v33  ;;  %v1754_v4 = vpop.permute.xlu1 %1753  ;;  %944 = vmatprep.subr.bf16.mxu1 %v2458_v31  ;;  %v1710_v53 = vsel %vm549_vm4, %v1708_v13, %v1709_v14 }
 0x1cc   : > { %v1756_v3 = vrot.slane %v1754_v4, 4  ;;  %2178 = vmatprep.subr.bf16.mxu0 %v2531_v12  ;;  %v1752_v56 = vpop.permute.xlu0 %1751  ;;  %945 = vmatpush1.bf16.msra.mxu1 %v2457_v11  ;;  %v1711_v38 = vsel %vm4171_vm7, %v1705_v59, %v1710_v53 }
 0x1cd   : > { %v1755_v50 = vrot.slane %v1752_v56, 4 }
 0x1cf   : > { %2179 = vmatpush1.bf16.msra.mxu0 %v2530_v0  ;;  %v726_v55 = vpop.permute.xlu1 %725  ;;  %v1757_v58 = vsel %vm549_vm4, %v1755_v50, %v1756_v3 }
 0x1d0   : > { %v728_v15 = vrot.slane %v726_v55, 4  ;;  %2180 = vmatprep.subr.bf16.mxu0 %v2533_v43  ;;  %v724_v1 = vpop.permute.xlu0 %723  ;;  %v1759_v32 = vsel %vm4170_vm6, %v1752_v56, %v1757_v58 }
 0x1d1   : > { %v727_v12 = vrot.slane %v724_v1, 4  ;;  %v2537_v62 = vcombine.high %v1711_v38, %v1759_v32  ;;  %v2536_v19 = vcombine.low %v1711_v38, %v1759_v32 }
 0x1d3   : > { %2181 = vmatpush1.bf16.msra.mxu0 %v2532_v20  ;;  %v1811_v9 = vpop.permute.xlu1 %1810  ;;  %v729_v8 = vsel %vm549_vm4, %v727_v12, %v728_v15 }
 0x1d4   : > { %2182 = vmatprep.subr.bf16.mxu0 %v2535_v49  ;;  %v731_v63 = vsel %vm656_vm12, %v724_v1, %v729_v8  ;;  %v1809_v0 = vpop.permute.xlu0 %1808  ;;  %v1813_v34 = vrot.slane %v1811_v9, 4 }
 0x1d5   : > { %v2459_v18 = vcombine.low %v4172_v37, %v731_v63  ;;  %v2460_v25 = vcombine.high %v4172_v37, %v731_v63  ;;  %v1812_v27 = vrot.slane %v1809_v0, 4  ;;  %v876_v63 = vld [vmem:[%s4009_s2] sm:$0xf] }
 0x1d7   : > { %2183 = vmatpush1.bf16.msra.mxu0 %v2534_v26  ;;  %v1859_v29 = vpop.permute.xlu1 %1858  ;;  %946 = vmatprep.subr.bf16.mxu1 %v2460_v25  ;;  %v1814_v61 = vsel %vm549_vm4, %v1812_v27, %v1813_v34  ;;  %v2516_v25 = vcombine.low %v3726_v24, %v3726_v24  ;;  %v4181_v27 = vld [vmem:[#allocation29_spill] sm:$0xff] }
 0x1d8   : > { %v1861_v5 = vrot.slane %v1859_v29, 4  ;;  %2184 = vmatprep.subr.bf16.mxu0 %v2537_v62  ;;  %v1857_v6 = vpop.permute.xlu0 %1856  ;;  %947 = vmatpush1.bf16.msra.mxu1 %v2459_v18  ;;  %v1816_v43 = vsel %vm4173_vm10, %v1809_v0, %v1814_v61 }
 0x1d9   : > { %v1860_v51 = vrot.slane %v1857_v6, 4 }
 0x1db   : > { %2185 = vmatpush1.bf16.msra.mxu0 %v2536_v19  ;;  %v783_v54 = vpop.permute.xlu1 %782  ;;  %v1862_v20 = vsel %vm549_vm4, %v1860_v51, %v1861_v5  ;;  %v4182_v5 = vld [vmem:[#allocation30_spill] sm:$0xff] }
 0x1dc   : > { %v1864_v57 = vsel %vm4174_vm11, %v1857_v6, %v1862_v20  ;;  %v781_v30 = vpop.permute.xlu0 %780  ;;  %v785_v7 = vrot.slane %v783_v54, 4 }
 0x1dd   : > { %v2538_v23 = vcombine.low %v1816_v43, %v1864_v57  ;;  %v2539_v60 = vcombine.high %v1816_v43, %v1864_v57  ;;  %v784_v52 = vrot.slane %v781_v30, 4  ;;  %v4183_v43 = vld [vmem:[#allocation20_spill] sm:$0xff]  ;;  %v4184_v57 = vld [vmem:[#allocation38_spill] sm:$0xff] }
 0x1df   : > { %v820_v48 = vpop.permute.xlu1 %819  ;;  %2186 = vmatprep.subr.bf16.mxu0 %v2539_v60  ;;  %v786_v42 = vsel %vm549_vm4, %v784_v52, %v785_v7  ;;  %v311_v60 = vld [vmem:[%s4011_s4 + $0x28] sm:$0xff]  ;;  %v312_v7 = vld [vmem:[%s4011_s4 + $0x30] sm:$0xff]  ;;  %v313_v52 = vld [vmem:[%s4012_s5] sm:$0xff] }
 0x1e0   : > { %v822_v17 = vrot.slane %v820_v48, 4  ;;  %v818_v44 = vpop.permute.xlu0 %817  ;;  %2187 = vmatpush1.bf16.msra.mxu0 %v2538_v23  ;;  %v788_v39 = vsel %vm4175_vm13, %v781_v30, %v786_v42  ;;  %v306_v23 = vld [vmem:[%s4011_s4] sm:$0xff] }
 0x1e1   : > { %v821_v41 = vrot.slane %v818_v44, 4  ;;  %v317_v48 = vld [vmem:[%s4012_s5 + $0x20] sm:$0xff] }
 0x1e2   : > { %v4186_v42 = vld [vmem:[#allocation27_spill] sm:$0xff] }
 0x1e3   : > { %v1896_v22 = vpop.permute.xlu1 %1895  ;;  %v823_v21 = vsel %vm549_vm4, %v821_v41, %v822_v17  ;;  %v318_v17 = vld [vmem:[%s4012_s5 + $0x28] sm:$0xff] }
 0x1e4   : > { %v825_v28 = vsel %vm562_vm3, %v818_v44, %v823_v21  ;;  %v1894_v10 = vpop.permute.xlu0 %1893  ;;  %v1898_v45 = vrot.slane %v1896_v22, 4  ;;  %v319_v44 = vld [vmem:[%s4012_s5 + $0x30] sm:$0xff] }
 0x1e5   : > { %v2461_v26 = vcombine.low %v788_v39, %v825_v28  ;;  %v2462_v49 = vcombine.high %v788_v39, %v825_v28  ;;  %v1897_v46 = vrot.slane %v1894_v10, 4 }
 0x1e7   : > { %v1944_v35 = vpop.permute.xlu1 %1943  ;;  %948 = vmatprep.subr.bf16.mxu1 %v2462_v49  ;;  %v1899_v40 = vsel %vm549_vm4, %v1897_v46, %v1898_v45 }
 0x1e8   : > { %v1946_v36 = vrot.slane %v1944_v35, 4  ;;  %v1942_v47 = vpop.permute.xlu0 %1941  ;;  %949 = vmatpush1.bf16.msra.mxu1 %v2461_v26  ;;  %v1901_v4 = vsel %vm4176_vm14, %v1894_v10, %v1899_v40  ;;  %v4188_v40 = vld [vmem:[#allocation31_spill] sm:$0xff] }
 0x1e9   : > { %v1945_v59 = vrot.slane %v1942_v47, 4 }
 0x1eb   : > { %v868_v33 = vpop.permute.xlu1 %867  ;;  %v1947_v11 = vsel %vm549_vm4, %v1945_v59, %v1946_v36  ;;  %v4187_v36 = vld [vmem:[#allocation26_spill] sm:$0xff] }
 0x1ec   : > { %v870_v31 = vrot.slane %v868_v33, 4  ;;  %v1949_v3 = vsel %vm4177_vm15, %v1942_v47, %v1947_v11  ;;  %v866_v14 = vpop.permute.xlu0 %865 }
 0x1ed   : > { %v2540_v13 = vcombine.low %v1901_v4, %v1949_v3  ;;  %v2541_v56 = vcombine.high %v1901_v4, %v1949_v3  ;;  %v869_v50 = vrot.slane %v866_v14, 4  ;;  %v4189_v4 = vld [vmem:[#allocation15_spill] sm:$0xff] }
 0x1ef   : > { %v1992_v55 = vpop.permute.xlu1 %1991  ;;  %v871_v58 = vsel %vm549_vm4, %v869_v50, %v870_v31  ;;  %2188 = vmatprep.subr.bf16.mxu0 %v2541_v56  ;;  %v4191_v56 = vld [vmem:[#allocation40_spill] sm:$0xff] }
 0x1f0   : > { %v1994_v15 = vrot.slane %v1992_v55, 4  ;;  %v873_v53 = vsel %vm4178_vm0, %v866_v14, %v871_v58  ;;  %v1990_v1 = vpop.permute.xlu0 %1989  ;;  %2189 = vmatpush1.bf16.msra.mxu0 %v2540_v13  ;;  %v4190_v14 = vld [vmem:[#allocation39_spill] sm:$0xff]  ;;  %v4192_v58 = vld [vmem:[#allocation22_spill] sm:$0xff] }
 0x1f1   : > { %v2463_v32 = vcombine.low %v873_v53, %v873_v53  ;;  %v2464_v12 = vcombine.high %v873_v53, %v873_v53  ;;  %v1993_v9 = vrot.slane %v1990_v1, 4  ;;  %v4193_v53 = vld [vmem:[#allocation23_spill] sm:$0xff] }
 0x1f3   : > { %v1995_v38 = vsel %vm549_vm4, %v1993_v9, %v1994_v15  ;;  %2465 = vmatprep.subr.msk.bf16.mxu1 %vm549_vm4, %v2464_v12  ;;  %v937_v8 = vsel %vm549_vm4, %v2463_v32, 0 }
 0x1f4   : > { %v1997_v62 = vsel %vm4179_vm1, %v1990_v1, %v1995_v38  ;;  %951 = vmatpush1.bf16.msra.mxu1 %v937_v8 }
 0x1f5   : > { %v2542_v0 = vcombine.low %v1997_v62, %v1997_v62  ;;  %v2543_v37 = vcombine.high %v1997_v62, %v1997_v62 }
 0x1f7   : > { %2466 = vmatmul.mubr.msk.bf16.vlgmr.msra.gmra.mrb[8].mxu1 %vm4180_vm2, %v876_v63  ;;  %2544 = vmatprep.subr.msk.bf16.mxu0 %vm549_vm4, %v2543_v37  ;;  %v2161_v18 = vsel %vm549_vm4, %v2542_v0, 0 }
 0x1f8   : > { %2191 = vmatpush1.bf16.msra.mxu0 %v2161_v18 }
 0x1fb   : > { %2199 = vmatmul.mubr.bf16.vlgmr.msra.gmra.mrb[0].mxu0 %v2516_v25 }
 0x200   : > { %v456_v6 = vpop.permute.xlu1 %455 }
 0x201   : > { %v428_v34 = vpop.permute.xlu0 %427 }
 0x202   : > { %v436_v29 = vmul.f32 %v428_v34, %v4181_v27  ;;  %v437_v19 = vmul.f32 %v428_v34, %v4182_v5 }
 0x204   : > { %v464_v61 = vadd.f32 %v456_v6, %v436_v29  ;;  %v465_v51 = vadd.f32 %v456_v6, %v437_v19 }
 0x205   : > { %v2235_v41 = vpop.permute.xlu0 %2234 }
 0x206   : > { %v2229_v54 = vmul.f32 %v4141_v2, %v464_v61  ;;  %v2230_v20 = vmul.f32 %v3153_v16, %v465_v51  ;;  %v2249_v24 = vmul.f32 %v4183_v43, %v464_v61  ;;  %v2250_v30 = vmul.f32 %v4184_v57, %v465_v51  ;;  %v4185_v2 = vld [vmem:[#allocation21_spill] sm:$0xff]  ;;  %v310_v16 = vld [vmem:[%s4011_s4 + $0x20] sm:$0xff] }
 0x208   : > { %2236 = vrot.lane.b32.xlu1 %v2229_v54, %s4122_s13  ;;  %2238 = vrot.lane.b32.xlu0 %v2230_v20, %s4122_s13 }
 0x20c   : > { %2255 = vrot.lane.b32.xlu1 %v2249_v24, %s2765_s20  ;;  %2257 = vrot.lane.b32.xlu0 %v2250_v30, %s2765_s20 }
 0x210   : > { %2259 = vrot.lane.b32.xlu1 %v4185_v2, %s2765_s20  ;;  %412 = vperm.xlu0 %2684, %v306_v23  }
 0x214   : > { %985 = vperm.xlu1 %2685, %v310_v16   ;;  %2209 = vperm.xlu0 %2684, %v311_v60  }
 0x218   : > { %2315 = vperm.xlu1 %2685, %v312_v7   ;;  %440 = vperm.xlu0 %2684, %v313_v52  }
 0x21c   : > { %992 = vperm.xlu1 %2685, %v317_v48   ;;  %2216 = vperm.xlu0 %2684, %v318_v17  }
 0x220   : > { %2280 = vrot.lane.b32.xlu1 %v4186_v42, %s2771_s23  ;;  %2322 = vperm.xlu0 %2684, %v319_v44  }
 0x27a   : > { %v2237_v22 = vpop.permute.xlu1 %2236  ;;  %v2239_v21 = vpop.permute.xlu0 %2238 }
 0x27b   : > { %v2240_v39 = vsel %vm682_vm8, %v2235_v41, %v2237_v22  ;;  %v2241_v49 = vsel %vm682_vm8, %v2237_v22, %v2239_v21 }
 0x27c   : > { %v2244_v28 = vadd.f32 %v2240_v39, %v464_v61  ;;  %v2245_v35 = vadd.f32 %v2241_v49, %v465_v51 }
 0x27e   : > { %v2256_v10 = vpop.permute.xlu1 %2255  ;;  %v2258_v26 = vpop.permute.xlu0 %2257 }
 0x27f   : > { %v2261_v45 = vsel %vm656_vm12, %v2256_v10, %v2258_v26 }
 0x280   : > { %v2265_v46 = vadd.f32 %v2261_v45, %v2244_v28 }
 0x282   : > { %v2275_v47 = vmul.f32 %v2265_v46, %v4187_v36  ;;  %v2295_v59 = vmul.f32 %v2265_v46, %v4188_v40  ;;  %v2260_v33 = vpop.permute.xlu1 %2259 }
 0x283   : > { %v2262_v11 = vsel %vm656_vm12, %v2258_v26, %v2260_v33 }
 0x284   : > { %v2266_v31 = vadd.f32 %v2262_v11, %v2245_v35  ;;  %2301 = vrot.lane.b32.xlu1 %v2295_v59, %s2762_s25  ;;  %2282 = vrot.lane.b32.xlu0 %v2275_v47, %s2771_s23 }
 0x286   : > { %v2276_v3 = vmul.f32 %v2266_v31, %v4189_v4  ;;  %v2296_v13 = vmul.f32 %v2266_v31, %v4190_v14 }
 0x288   : > { %2284 = vrot.lane.b32.xlu1 %v2276_v3, %s2771_s23  ;;  %2303 = vrot.lane.b32.xlu0 %v2296_v13, %s2762_s25 }
 0x28c   : > { %2305 = vrot.lane.b32.xlu1 %v4191_v56, %s2762_s25  ;;  %s2618_s25 = sshll.u32 %s2847_s9, 10  ;;  %s2779_s9 = smov [#allocation8]  }
 0x28d   : > { %s3958_s10 = scalar_lea.hbm %s4015_s8, %s2618_s25  ;;  %s2694_s26 = sshll.u32 %s2779_s9, 4  ;;  %s2695_s26 = int_to_ptr.vmem [resolvable:$false] %s2694_s26 }
 0x28e   : > { %s2696_s13 = scalar_lea.vmem %s2695_s26, 2048  ;;  %p2697_p0 = scmp.lt.s32.totalorder %s3960_s19, %s2695_s26 }
 0x28f   : > { %v413_v50 = vpop.permute.xlu0 %412  ;;  %p2698_p1 = scmp.lt.s32.totalorder %s2696_s13, %s2690_s18 }
 0x290   : > { %v430_v15 = vmul.f32 %v413_v50, %v4192_v58  ;;  %v431_v1 = vmul.f32 %v413_v50, %v4193_v53 }
 0x291   : > { %p2699_p2 = por %p2698_p1, %p2697_p0 }
 0x293   : > { %v2210_v55 = vpop.permute.xlu0 %2209  ;;  %v986_v62 = vpop.permute.xlu1 %985  ;;  %p2700_p3 = pnand %p2699_p2, %p2693_p13 }
 0x297   : > { %v441_v32 = vpop.permute.xlu0 %440  ;;  %v2316_v63 = vpop.permute.xlu1 %2315 }
 0x298   : > { %v458_v12 = vadd.f32 %v441_v32, %v430_v15  ;;  %v459_v9 = vadd.f32 %v441_v32, %v431_v1 }
 0x29a   : > { %v2327_v38 = vmax.f32 %v458_v12, 0.0  ;;  %v2328_v8 = vmax.f32 %v459_v9, 0.0 }
 0x29b   : > { %v993_v25 = vpop.permute.xlu1 %992  ;;  %v2217_v20 = vpop.permute.xlu0 %2216 }
 0x29c   : > { %2329 = vst [vmem:[%s3940_s24] sm:$0xff] %v2327_v38  ;;  %2330 = vst [vmem:[%s3940_s24 + $0x8] sm:$0xff] %v2328_v8 }
 0x29f   : > { %v2281_v7 = vpop.permute.xlu1 %2280  ;;  %v2323_v52 = vpop.permute.xlu0 %2322 }
 0x2ca   : > { %v976_v0 = vpop.f32.mrb[8].mxu1 }
 0x2cb   : > { %v988_v37 = vmul.f32 %v986_v62, %v976_v0  ;;  %v978_v18 = vpop.f32.mrb[9].mxu1 }
 0x2cc   : > { %v989_v34 = vmul.f32 %v986_v62, %v978_v18  ;;  %v980_v27 = vpop.f32.mrb[10].mxu1 }
 0x2cd   : > { %v995_v29 = vadd.f32 %v993_v25, %v988_v37  ;;  %v981_v5 = vpop.f32.mrb[11].mxu1 }
 0x2ce   : > { %v996_v19 = vadd.f32 %v993_v25, %v989_v34  ;;  %v2200_v6 = vpop.f32.mrb[0].mxu0 }
 0x2cf   : > { %v2331_v61 = vmax.f32 %v995_v29, 0.0  ;;  %v2212_v51 = vmul.f32 %v2210_v55, %v2200_v6  ;;  %v2202_v54 = vpop.f32.mrb[1].mxu0 }
 0x2d0   : > { %v2332_v43 = vmax.f32 %v996_v19, 0.0  ;;  %v2213_v24 = vmul.f32 %v2210_v55, %v2202_v54  ;;  %v2204_v57 = vpop.f32.mrb[2].mxu0 }
 0x2d1   : > { %2333 = vst [vmem:[%s3940_s24 + $0x10] sm:$0xff] %v2331_v61  ;;  %v2219_v30 = vadd.f32 %v2217_v20, %v2212_v51  ;;  %v2205_v23 = vpop.f32.mrb[3].mxu0 }
 0x2d2   : > { %2334 = vst [vmem:[%s3940_s24 + $0x18] sm:$0xff] %v2332_v43  ;;  %v2220_v2 = vadd.f32 %v2217_v20, %v2213_v24 }
 0x2d3   : > { %v2335_v16 = vmax.f32 %v2219_v30, 0.0 }
 0x2d4   : > { %v2336_v60 = vmax.f32 %v2220_v2, 0.0 }
 0x2d5   : > { %2337 = vst [vmem:[%s3940_s24 + $0x20] sm:$0xff] %v2335_v16 }
 0x2d6   : > { %2338 = vst [vmem:[%s3940_s24 + $0x28] sm:$0xff] %v2336_v60 }
 0x2f6   : > { %v2302_v48 = vpop.permute.xlu1 %2301  ;;  %v2283_v17 = vpop.permute.xlu0 %2282 }
 0x2f7   : > { %v2286_v44 = vsel %vm588_vm9, %v2281_v7, %v2283_v17 }
 0x2f8   : > { %v2290_v42 = vadd.f32 %v2286_v44, %v2265_v46 }
 0x2fa   : > { %v2285_v41 = vpop.permute.xlu1 %2284  ;;  %v2304_v22 = vpop.permute.xlu0 %2303 }
 0x2fb   : > { %v2287_v21 = vsel %vm588_vm9, %v2283_v17, %v2285_v41  ;;  %v2307_v39 = vsel %vm562_vm3, %v2302_v48, %v2304_v22 }
 0x2fc   : > { %v2311_v28 = vadd.f32 %v2307_v39, %v2290_v42  ;;  %v2291_v10 = vadd.f32 %v2287_v21, %v2266_v31 }
 0x2fe   : > { %v2318_v26 = vmul.f32 %v2316_v63, %v2311_v28  ;;  %v2306_v49 = vpop.permute.xlu1 %2305 }
 0x2ff   : > { %v2308_v45 = vsel %vm562_vm3, %v2304_v22, %v2306_v49 }
 0x300   : > { %v2325_v35 = vadd.f32 %v2323_v52, %v2318_v26  ;;  %v2312_v36 = vadd.f32 %v2308_v45, %v2291_v10 }
 0x302   : > { %v2339_v47 = vmax.f32 %v2325_v35, 0.0  ;;  %v2319_v46 = vmul.f32 %v2316_v63, %v2312_v36 }
 0x304   : > { %2341 = vst [vmem:[%s3940_s24 + $0x30] sm:$0xff] %v2339_v47  ;;  %v2326_v40 = vadd.f32 %v2323_v52, %v2319_v46 }
 0x306   : > { %v2340_v59 = vmax.f32 %v2326_v40, 0.0 }
 0x308   : > { %2342 = vst [vmem:[%s3940_s24 + $0x38] sm:$0xff] %v2340_v59 }
 0x309   : > { %2703 = shalt.err (!%p2700_p3)
}
 0x30a   : > { %s2704_s22 = scalar_lea.hbm %s3958_s10, 1024  ;;  %s2708_s25 = scalar_lea.hbm %s4015_s8, 2048 }
 0x30b   : > { %p2705_p4 = scmp.ne.s32.totalorder %s3958_s10, %s2704_s22  ;;  %p2709_p9 = scmp.lt.u32.totalorder %s3958_s10, %s4015_s8 }
 0x30c   : > { %p2710_p10 = scmp.lt.u32.totalorder %s2708_s25, %s2704_s22  ;;  %p2712_p12 = scmp.lt.u32.totalorder %s2704_s22, %s3958_s10 }
 0x30d   : > { %p2706_p7 = pnand %p2705_p4, %p2864_p5 }
 0x30e   : > { %p2711_p11 = por %p2710_p10, %p2709_p9 }
 0x30f   : > { %p2707_p8 = pneg %p2706_p7 }
 0x310   : > { %p2713_p13 = por %p2712_p12, %p2711_p11 }
 0x312   : > { %p2714_p0 = pnand %p2713_p13, %p2707_p8 }
 0x314   : > { %2717 = shalt.err (!%p2714_p0)
}
 0x315   : > { %s2780_s18 = smov 256  }
 0x316   : > { %2619 = dma.vmem_to_hbm [thread:$0]  (%p2864_p5), %s3960_s19, 1024, %s3958_s10, %s3965_s21, %s2780_s18, %s2780_s18, %s2771_s23  }
 0x317 PF: > { %p2625_p1 = scmp.ge.s32.totalorder %s2752_s30, 2  ;;  %s2372_s9 = sand.u32 1, %s2740_s27  }
 0x318   : > { %s2373_s26 = scalar_lea.sflag [#allocation9], %s2372_s9 }
 0x319   : > { %p2622_p2 = pnand %p2625_p1, %p2868_p6 }
 0x31b   : > { %2735 = dma.done.wait (!%p2622_p2), %s2373_s26, 1024  }
 0x31c   : > { %2737 = vsyncadd (!%p2622_p2), %s2373_s26, 4294966272  ;;  %p18_p3 = scmp.ge.s32.totalorder %s2851_s11, 4   ;;  %s4194_s27 = smov %s2744_s28 }
 0x31d   : > { %s4195_s28 = smov %s2748_s29  ;;  %s4196_s29 = smov %s2862_s14 }
 0x31e   : > { %s4197_s30 = smov %s2851_s11  ;;  %20 = sbr.rel (!%p18_p3) target bundleno = 3 (0x3), region = 93 }
 0x325   :  { %2378 = vsyncpa [#allocation9], 1 }
 0x326   :  { %2380 = vsyncpa [#allocation9 + $0x1], 1 }

</bundles_post_ra>
